<compile_context>
chip_gen: v7x
topology: tpu7x:2x2x1
jax: 0.10.0
libtpu: 0.0.40
codegen_flags: <defaults>
</compile_context>

<pallas_src>
import math

import jax
import jax.numpy as jnp
from jax.experimental import pallas as pl
from jax.experimental.pallas import tpu as pltpu

# ---- model dims (small, TPU-friendly) ----
B = 2            # batch
S = 8            # sequence length
H = 128          # hidden size
NUM_HEADS = 2
HEAD_DIM = H // NUM_HEADS
INTERMEDIATE = 256
NUM_LAYERS = 2
VOCAB = 64
LN_EPS = 1e-12   # BERT LayerNorm eps
BS = B * S       # tokens per call (matmul M dim)


def _layer_norm(x, gamma, beta):
    mean = jnp.mean(x, axis=-1, keepdims=True)
    var = jnp.mean((x - mean) ** 2, axis=-1, keepdims=True)
    return (x - mean) * jax.lax.rsqrt(var + LN_EPS) * gamma + beta


def _gelu(x):
    # TODO(synk): HF BERT uses erf-GELU; tanh approximation used here for
    # robust Pallas TPU lowering (numerics differ only slightly).
    c = math.sqrt(2.0 / math.pi)
    return 0.5 * x * (1.0 + jnp.tanh(c * (x + 0.044715 * x * x * x)))


def fused_bert_kernel(x_ref, attn_bias_ref, head_mask_ref,
                      wqkv_ref, bqkv_ref, wo_ref, bo_ref,
                      ln1_g_ref, ln1_b_ref,
                      w1_ref, b1_ref, w2_ref, b2_ref,
                      ln2_g_ref, ln2_b_ref,
                      out_ref):
    """All NUM_LAYERS transformer layers over all B*S tokens, one kernel."""
    x = x_ref[...]                              # (B*S, H) f32
    attn_bias = attn_bias_ref[...]              # (NUM_HEADS*B*S, B*S) f32
    head_masks = [head_mask_ref[h:h + 1, :] for h in range(NUM_HEADS)]  # (1,H)
    scale = 1.0 / math.sqrt(HEAD_DIM)

    for l in range(NUM_LAYERS):                 # unrolled at trace time
        x_bf = x.astype(jnp.bfloat16)

        # ---- fused QKV projection: one (B*S, H) @ (H, 3H) MXU matmul ----
        qkv = jnp.dot(x_bf, wqkv_ref[l],
                      preferred_element_type=jnp.float32) + bqkv_ref[l]
        q = qkv[:, 0:H]                         # 128-lane-aligned slices
        k = qkv[:, H:2 * H]
        v = qkv[:, 2 * H:3 * H]

        # ---- batched attention: 2 matmuls for all (batch, head) pairs ----
        # Stack head-masked Q along the sublane (M) axis -> (NH*B*S, H).
        q_stack = jnp.concatenate([q * hm for hm in head_masks],
                                  axis=0).astype(jnp.bfloat16)
        k_bf = k.astype(jnp.bfloat16)
        # scores = Q . K^T without materializing the transpose (contract last
        # axes of both operands on the MXU).
        scores = jax.lax.dot_general(
            q_stack, k_bf,
            dimension_numbers=(((1,), (1,)), ((), ())),
            preferred_element_type=jnp.float32) * scale
        # block-diagonal cross-sequence mask + key-padding bias (precomputed)
        scores = scores + attn_bias
        scores = scores - jnp.max(scores, axis=-1, keepdims=True)
        p = jnp.exp(scores)                     # f32 softmax
        p = p / jnp.sum(p, axis=-1, keepdims=True)   # exact divide (tiny)

        # ONE PV matmul for all heads: (NH*B*S, B*S) @ (B*S, H).
        ctx_stack = jnp.dot(p.astype(jnp.bfloat16), v.astype(jnp.bfloat16),
                            preferred_element_type=jnp.float32)
        # Per-head output mask + sum of head slabs -> (B*S, H).
        ctx = ctx_stack[0:BS, :] * head_masks[0]
        for h in range(1, NUM_HEADS):
            ctx = ctx + ctx_stack[h * BS:(h + 1) * BS, :] * head_masks[h]

        # ---- output projection + residual LayerNorm ----
        attn_out = jnp.dot(ctx.astype(jnp.bfloat16), wo_ref[l],
                           preferred_element_type=jnp.float32) + bo_ref[l]
        x = _layer_norm(x + attn_out, ln1_g_ref[l], ln1_b_ref[l])

        # ---- FFN + residual LayerNorm ----
        h1 = _gelu(jnp.dot(x.astype(jnp.bfloat16), w1_ref[l],
                           preferred_element_type=jnp.float32) + b1_ref[l])
        ffn_out = jnp.dot(h1.astype(jnp.bfloat16), w2_ref[l],
                          preferred_element_type=jnp.float32) + b2_ref[l]
        x = _layer_norm(x + ffn_out, ln2_g_ref[l], ln2_b_ref[l])

    # Lane-dense (B*S, 128) output, written once.
    out_ref[...] = x


def _full_spec(shape):
    """Whole-array block (single grid step)."""
    ndim = len(shape)
    return pl.BlockSpec(shape, lambda i, _nd=ndim: (0,) * _nd)


def bert_encoder(x_flat, attn_bias, head_masks, enc):
    """x_flat: (B*S, H) f32; attn_bias: (NH*B*S, B*S) f32;
    head_masks: (NUM_HEADS, H) f32; enc: stacked per-layer params."""
    in_specs = [
        _full_spec((BS, H)),                       # activations
        _full_spec((NUM_HEADS * BS, BS)),          # attention bias
        _full_spec((NUM_HEADS, H)),                # head masks
        _full_spec((NUM_LAYERS, H, 3 * H)),        # wqkv
        _full_spec((NUM_LAYERS, 1, 3 * H)),        # bqkv
        _full_spec((NUM_LAYERS, H, H)),            # wo
        _full_spec((NUM_LAYERS, 1, H)),            # bo
        _full_spec((NUM_LAYERS, 1, H)),            # ln1 gamma
        _full_spec((NUM_LAYERS, 1, H)),            # ln1 beta
        _full_spec((NUM_LAYERS, H, INTERMEDIATE)),  # w1
        _full_spec((NUM_LAYERS, 1, INTERMEDIATE)),  # b1
        _full_spec((NUM_LAYERS, INTERMEDIATE, H)),  # w2
        _full_spec((NUM_LAYERS, 1, H)),            # b2
        _full_spec((NUM_LAYERS, 1, H)),            # ln2 gamma
        _full_spec((NUM_LAYERS, 1, H)),            # ln2 beta
    ]
    # TODO(synk): at real BioClinicalBERT dims (H=768, FFN=3072, S=512) this
    # whole-model-resident scheme must be re-tiled (tile the FFN N dim and the
    # QKV 3H dim, restore a layer grid axis, add a "parallel" token axis for
    # v7x's 2 TensorCores) and vmem_limit_bytes set explicitly for v7x 64 MiB.
    return pl.pallas_call(
        fused_bert_kernel,
        out_shape=jax.ShapeDtypeStruct((BS, H), jnp.float32),
        grid=(1,),
        in_specs=in_specs,
        out_specs=pl.BlockSpec((BS, H), lambda i: (0, 0)),
        compiler_params=pltpu.CompilerParams(
            dimension_semantics=("arbitrary",)),
    )(x_flat, attn_bias, head_masks,
      enc["wqkv"], enc["bqkv"], enc["wo"], enc["bo"],
      enc["ln1_g"], enc["ln1_b"], enc["w1"], enc["b1"],
      enc["w2"], enc["b2"], enc["ln2_g"], enc["ln2_b"])


def init_params(key):
    std = 0.02
    keys = jax.random.split(key, 7)
    L = NUM_LAYERS
    params = {
        "word_emb": jax.random.normal(keys[0], (VOCAB, H), jnp.float32) * std,
        "pos_emb": jax.random.normal(keys[1], (S, H), jnp.float32) * std,
        "type_emb": jax.random.normal(keys[2], (2, H), jnp.float32) * std,
        "emb_ln_g": jnp.ones((H,), jnp.float32),
        "emb_ln_b": jnp.zeros((H,), jnp.float32),
        "enc": {
            # stacked per-layer weights; matmul weights stored bf16
            "wqkv": (jax.random.normal(keys[3], (L, H, 3 * H), jnp.float32)
                     * std).astype(jnp.bfloat16),
            "bqkv": jnp.zeros((L, 1, 3 * H), jnp.float32),
            "wo": (jax.random.normal(keys[4], (L, H, H), jnp.float32)
                   * std).astype(jnp.bfloat16),
            "bo": jnp.zeros((L, 1, H), jnp.float32),
            "ln1_g": jnp.ones((L, 1, H), jnp.float32),
            "ln1_b": jnp.zeros((L, 1, H), jnp.float32),
            "w1": (jax.random.normal(keys[5], (L, H, INTERMEDIATE), jnp.float32)
                   * std).astype(jnp.bfloat16),
            "b1": jnp.zeros((L, 1, INTERMEDIATE), jnp.float32),
            "w2": (jax.random.normal(keys[6], (L, INTERMEDIATE, H), jnp.float32)
                   * std).astype(jnp.bfloat16),
            "b2": jnp.zeros((L, 1, H), jnp.float32),
            "ln2_g": jnp.ones((L, 1, H), jnp.float32),
            "ln2_b": jnp.zeros((L, 1, H), jnp.float32),
        },
    }
    return params


@jax.jit
def bioclinicalbert_ft_forward(params, input_ids, attention_mask):
    """Reproduces BioClinicalBERT_FT.forward: returns CLS embedding (B, H)."""
    # --- embeddings (gather + LN; fused into the same jit as the kernel) ---
    emb = (params["word_emb"][input_ids]                  # (B, S, H)
           + params["pos_emb"][None, :, :]
           + params["type_emb"][0][None, None, :])        # token_type_ids == 0
    mean = jnp.mean(emb, axis=-1, keepdims=True)
    var = jnp.mean((emb - mean) ** 2, axis=-1, keepdims=True)
    hidden = ((emb - mean) * jax.lax.rsqrt(var + LN_EPS)
              * params["emb_ln_g"] + params["emb_ln_b"]).astype(jnp.float32)

    x_flat = hidden.reshape(BS, H)                        # batch folded into M

    # --- attention bias: key padding + block-diagonal cross-sequence mask ---
    # Rows index (head, batch, query pos); columns index (batch, key pos).
    key_bias = ((1.0 - attention_mask.astype(jnp.float32))
                * (-1e9)).reshape(1, BS)                  # (1, B*S)
    col_batch = jnp.repeat(jnp.arange(B), S)              # (B*S,)
    row_batch = jnp.tile(col_batch, NUM_HEADS)            # (NH*B*S,)
    block_bias = jnp.where(row_batch[:, None] == col_batch[None, :],
                           0.0, -1e9)                     # (NH*B*S, B*S)
    attn_bias = (block_bias + key_bias).astype(jnp.float32)

    # --- per-head lane masks, built once (constant-folded under jit) ---
    lane = jnp.arange(H)
    head_ids = jnp.arange(NUM_HEADS)
    head_masks = ((lane[None, :] // HEAD_DIM)
                  == head_ids[:, None]).astype(jnp.float32)  # (NUM_HEADS, H)

    # --- all transformer layers in one fused Pallas kernel ---
    out_flat = bert_encoder(x_flat, attn_bias, head_masks, params["enc"])

    # --- CLS embedding: last_hidden_state[:, 0, :] ---
    return out_flat.reshape(B, S, H)[:, 0, :]


if __name__ == "__main__":
    key = jax.random.PRNGKey(0)
    pkey, ikey = jax.random.split(key)
    params = init_params(pkey)

    input_ids = jax.random.randint(ikey, (B, S), 0, VOCAB, dtype=jnp.int32)
    attention_mask = jnp.array(
        [[1, 1, 1, 1, 1, 1, 1, 1],
         [1, 1, 1, 1, 1, 0, 0, 0]], dtype=jnp.int32)

    cls_embedding = bioclinicalbert_ft_forward(params, input_ids, attention_mask)
    cls_embedding = jax.block_until_ready(cls_embedding)

    assert cls_embedding.shape == (B, H)
    assert bool(jnp.all(jnp.isfinite(cls_embedding)))
    print("KERNEL_OK")
</pallas_src>

<mosaic_0001>
module attributes {stable_mosaic.version = 11 : i64} {
  func.func @fused_bert_kernel(%arg0: i32, %arg1: memref<16x128xf32, #tpu.memory_space<vmem>>, %arg2: memref<32x16xf32, #tpu.memory_space<vmem>>, %arg3: memref<2x128xf32, #tpu.memory_space<vmem>>, %arg4: memref<2x128x384xbf16, #tpu.memory_space<vmem>>, %arg5: memref<2x1x384xf32, #tpu.memory_space<vmem>>, %arg6: memref<2x128x128xbf16, #tpu.memory_space<vmem>>, %arg7: memref<2x1x128xf32, #tpu.memory_space<vmem>>, %arg8: memref<2x1x128xf32, #tpu.memory_space<vmem>>, %arg9: memref<2x1x128xf32, #tpu.memory_space<vmem>>, %arg10: memref<2x128x256xbf16, #tpu.memory_space<vmem>>, %arg11: memref<2x1x256xf32, #tpu.memory_space<vmem>>, %arg12: memref<2x256x128xbf16, #tpu.memory_space<vmem>>, %arg13: memref<2x1x128xf32, #tpu.memory_space<vmem>>, %arg14: memref<2x1x128xf32, #tpu.memory_space<vmem>>, %arg15: memref<2x1x128xf32, #tpu.memory_space<vmem>>, %arg16: memref<16x128xf32, #tpu.memory_space<vmem>>) attributes {dimension_semantics = [#tpu.dimension_semantics<arbitrary>], iteration_bounds = array<i64: 1>, scalar_prefetch = 0 : i64, scratch_operands = 0 : i64, tpu.core_type = #tpu.core_type<tc>, window_params = [{pipeline_mode = #tpu.pipeline_mode<synchronous>, transform_indices = @transform_0, window_bounds = array<i64: 16, 128>}, {pipeline_mode = #tpu.pipeline_mode<synchronous>, transform_indices = @transform_1, window_bounds = array<i64: 32, 16>}, {pipeline_mode = #tpu.pipeline_mode<synchronous>, transform_indices = @transform_2, window_bounds = array<i64: 2, 128>}, {pipeline_mode = #tpu.pipeline_mode<synchronous>, transform_indices = @transform_3, window_bounds = array<i64: 2, 128, 384>}, {pipeline_mode = #tpu.pipeline_mode<synchronous>, transform_indices = @transform_4, window_bounds = array<i64: 2, 1, 384>}, {pipeline_mode = #tpu.pipeline_mode<synchronous>, transform_indices = @transform_5, window_bounds = array<i64: 2, 128, 128>}, {pipeline_mode = #tpu.pipeline_mode<synchronous>, transform_indices = @transform_6, window_bounds = array<i64: 2, 1, 128>}, {pipeline_mode = #tpu.pipeline_mode<synchronous>, transform_indices = @transform_7, window_bounds = array<i64: 2, 1, 128>}, {pipeline_mode = #tpu.pipeline_mode<synchronous>, transform_indices = @transform_8, window_bounds = array<i64: 2, 1, 128>}, {pipeline_mode = #tpu.pipeline_mode<synchronous>, transform_indices = @transform_9, window_bounds = array<i64: 2, 128, 256>}, {pipeline_mode = #tpu.pipeline_mode<synchronous>, transform_indices = @transform_10, window_bounds = array<i64: 2, 1, 256>}, {pipeline_mode = #tpu.pipeline_mode<synchronous>, transform_indices = @transform_11, window_bounds = array<i64: 2, 256, 128>}, {pipeline_mode = #tpu.pipeline_mode<synchronous>, transform_indices = @transform_12, window_bounds = array<i64: 2, 1, 128>}, {pipeline_mode = #tpu.pipeline_mode<synchronous>, transform_indices = @transform_13, window_bounds = array<i64: 2, 1, 128>}, {pipeline_mode = #tpu.pipeline_mode<synchronous>, transform_indices = @transform_14, window_bounds = array<i64: 2, 1, 128>}, {pipeline_mode = #tpu.pipeline_mode<synchronous>, transform_indices = @transform_15, window_bounds = array<i64: 16, 128>}]} {
    %c0 = arith.constant 0 : index
    %c0_0 = arith.constant 0 : index
    %0 = vector.load %arg1[%c0, %c0_0] : memref<16x128xf32, #tpu.memory_space<vmem>>, vector<16x128xf32>
    %c0_1 = arith.constant 0 : index
    %c0_2 = arith.constant 0 : index
    %1 = vector.load %arg2[%c0_1, %c0_2] : memref<32x16xf32, #tpu.memory_space<vmem>>, vector<32x16xf32>
    %c0_3 = arith.constant 0 : index
    %c0_4 = arith.constant 0 : index
    %2 = vector.load %arg3[%c0_3, %c0_4] : memref<2x128xf32, #tpu.memory_space<vmem>>, vector<1x128xf32>
    %c1 = arith.constant 1 : index
    %c0_5 = arith.constant 0 : index
    %3 = vector.load %arg3[%c1, %c0_5] : memref<2x128xf32, #tpu.memory_space<vmem>>, vector<1x128xf32>
    %4 = arith.truncf %0 : vector<16x128xf32> to vector<16x128xbf16>
    %c0_6 = arith.constant 0 : index
    %c0_7 = arith.constant 0 : index
    %c0_8 = arith.constant 0 : index
    %5 = vector.load %arg4[%c0_6, %c0_7, %c0_8] : memref<2x128x384xbf16, #tpu.memory_space<vmem>>, vector<1x128x384xbf16>
    %6 = vector.shape_cast %5 : vector<1x128x384xbf16> to vector<128x384xbf16>
    %cst = arith.constant dense<0.000000e+00> : vector<16x384xf32>
    %7 = tpu.matmul %4, %6, %cst {dimension_numbers = #tpu.dot_dimension_numbers<[1], [0], [0], [1], [0, 0, 1, 1], [], []>} : vector<16x128xbf16>, vector<128x384xbf16>, vector<16x384xf32> -> vector<16x384xf32>
    %c0_9 = arith.constant 0 : index
    %c0_10 = arith.constant 0 : index
    %c0_11 = arith.constant 0 : index
    %8 = vector.load %arg5[%c0_9, %c0_10, %c0_11] : memref<2x1x384xf32, #tpu.memory_space<vmem>>, vector<1x1x384xf32>
    %9 = vector.shape_cast %8 : vector<1x1x384xf32> to vector<1x384xf32>
    %10 = vector.broadcast %9 : vector<1x384xf32> to vector<16x384xf32>
    %11 = arith.addf %7, %10 : vector<16x384xf32>
    %12 = vector.extract_strided_slice %11 {offsets = [0, 0], sizes = [16, 128], strides = [1, 1]} : vector<16x384xf32> to vector<16x128xf32>
    %13 = vector.extract_strided_slice %11 {offsets = [0, 128], sizes = [16, 128], strides = [1, 1]} : vector<16x384xf32> to vector<16x128xf32>
    %14 = vector.extract_strided_slice %11 {offsets = [0, 256], sizes = [16, 128], strides = [1, 1]} : vector<16x384xf32> to vector<16x128xf32>
    %15 = vector.broadcast %2 : vector<1x128xf32> to vector<16x128xf32>
    %16 = arith.mulf %12, %15 : vector<16x128xf32>
    %17 = vector.broadcast %3 : vector<1x128xf32> to vector<16x128xf32>
    %18 = arith.mulf %12, %17 : vector<16x128xf32>
    %19 = tpu.concatenate %16, %18 in 0 : vector<16x128xf32>, vector<16x128xf32> -> vector<32x128xf32>
    %20 = arith.truncf %19 : vector<32x128xf32> to vector<32x128xbf16>
    %21 = arith.truncf %13 : vector<16x128xf32> to vector<16x128xbf16>
    %cst_12 = arith.constant dense<0.000000e+00> : vector<32x16xf32>
    %22 = tpu.matmul %20, %21, %cst_12 {dimension_numbers = #tpu.dot_dimension_numbers<[1], [1], [0], [0], [0, 0, 1, 0], [], []>} : vector<32x128xbf16>, vector<16x128xbf16>, vector<32x16xf32> -> vector<32x16xf32>
    %cst_13 = arith.constant 1.250000e-01 : f32
    %23 = vector.broadcast %cst_13 : f32 to vector<32x16xf32>
    %24 = arith.mulf %22, %23 : vector<32x16xf32>
    %25 = arith.addf %24, %1 : vector<32x16xf32>
    %cst_14 = arith.constant dense<0xFF800000> : vector<32xf32>
    %26 = vector.multi_reduction <maximumf>, %25, %cst_14 [1] : vector<32x16xf32> to vector<32xf32>
    %27 = vector.shape_cast %26 : vector<32xf32> to vector<32x1xf32>
    %28 = vector.broadcast %27 : vector<32x1xf32> to vector<32x16xf32>
    %29 = arith.subf %25, %28 : vector<32x16xf32>
    %30 = math.exp %29 : vector<32x16xf32>
    %cst_15 = arith.constant dense<0.000000e+00> : vector<32xf32>
    %31 = vector.multi_reduction <add>, %30, %cst_15 [1] : vector<32x16xf32> to vector<32xf32>
    %32 = vector.shape_cast %31 : vector<32xf32> to vector<32x1xf32>
    %33 = vector.broadcast %32 : vector<32x1xf32> to vector<32x16xf32>
    %34 = arith.divf %30, %33 : vector<32x16xf32>
    %35 = arith.truncf %34 : vector<32x16xf32> to vector<32x16xbf16>
    %36 = arith.truncf %14 : vector<16x128xf32> to vector<16x128xbf16>
    %cst_16 = arith.constant dense<0.000000e+00> : vector<32x128xf32>
    %37 = tpu.matmul %35, %36, %cst_16 {dimension_numbers = #tpu.dot_dimension_numbers<[1], [0], [0], [1], [0, 0, 1, 1], [], []>} : vector<32x16xbf16>, vector<16x128xbf16>, vector<32x128xf32> -> vector<32x128xf32>
    %38 = vector.extract_strided_slice %37 {offsets = [0, 0], sizes = [16, 128], strides = [1, 1]} : vector<32x128xf32> to vector<16x128xf32>
    %39 = vector.broadcast %2 : vector<1x128xf32> to vector<16x128xf32>
    %40 = arith.mulf %38, %39 : vector<16x128xf32>
    %41 = vector.extract_strided_slice %37 {offsets = [16, 0], sizes = [16, 128], strides = [1, 1]} : vector<32x128xf32> to vector<16x128xf32>
    %42 = vector.broadcast %3 : vector<1x128xf32> to vector<16x128xf32>
    %43 = arith.mulf %41, %42 : vector<16x128xf32>
    %44 = arith.addf %40, %43 : vector<16x128xf32>
    %45 = arith.truncf %44 : vector<16x128xf32> to vector<16x128xbf16>
    %c0_17 = arith.constant 0 : index
    %c0_18 = arith.constant 0 : index
    %c0_19 = arith.constant 0 : index
    %46 = vector.load %arg6[%c0_17, %c0_18, %c0_19] : memref<2x128x128xbf16, #tpu.memory_space<vmem>>, vector<1x128x128xbf16>
    %47 = vector.shape_cast %46 : vector<1x128x128xbf16> to vector<128x128xbf16>
    %cst_20 = arith.constant dense<0.000000e+00> : vector<16x128xf32>
    %48 = tpu.matmul %45, %47, %cst_20 {dimension_numbers = #tpu.dot_dimension_numbers<[1], [0], [0], [1], [0, 0, 1, 1], [], []>} : vector<16x128xbf16>, vector<128x128xbf16>, vector<16x128xf32> -> vector<16x128xf32>
    %c0_21 = arith.constant 0 : index
    %c0_22 = arith.constant 0 : index
    %c0_23 = arith.constant 0 : index
    %49 = vector.load %arg7[%c0_21, %c0_22, %c0_23] : memref<2x1x128xf32, #tpu.memory_space<vmem>>, vector<1x1x128xf32>
    %50 = vector.shape_cast %49 : vector<1x1x128xf32> to vector<1x128xf32>
    %51 = vector.broadcast %50 : vector<1x128xf32> to vector<16x128xf32>
    %52 = arith.addf %48, %51 : vector<16x128xf32>
    %53 = arith.addf %0, %52 : vector<16x128xf32>
    %c0_24 = arith.constant 0 : index
    %c0_25 = arith.constant 0 : index
    %c0_26 = arith.constant 0 : index
    %54 = vector.load %arg8[%c0_24, %c0_25, %c0_26] : memref<2x1x128xf32, #tpu.memory_space<vmem>>, vector<1x1x128xf32>
    %55 = vector.shape_cast %54 : vector<1x1x128xf32> to vector<1x128xf32>
    %c0_27 = arith.constant 0 : index
    %c0_28 = arith.constant 0 : index
    %c0_29 = arith.constant 0 : index
    %56 = vector.load %arg9[%c0_27, %c0_28, %c0_29] : memref<2x1x128xf32, #tpu.memory_space<vmem>>, vector<1x1x128xf32>
    %57 = vector.shape_cast %56 : vector<1x1x128xf32> to vector<1x128xf32>
    %cst_30 = arith.constant dense<0.000000e+00> : vector<16xf32>
    %58 = vector.multi_reduction <add>, %53, %cst_30 [1] : vector<16x128xf32> to vector<16xf32>
    %59 = vector.shape_cast %58 : vector<16xf32> to vector<16x1xf32>
    %cst_31 = arith.constant 1.280000e+02 : f32
    %60 = vector.broadcast %cst_31 : f32 to vector<16x1xf32>
    %61 = arith.divf %59, %60 : vector<16x1xf32>
    %62 = vector.broadcast %61 : vector<16x1xf32> to vector<16x128xf32>
    %63 = arith.subf %53, %62 : vector<16x128xf32>
    %64 = arith.mulf %63, %63 : vector<16x128xf32>
    %cst_32 = arith.constant dense<0.000000e+00> : vector<16xf32>
    %65 = vector.multi_reduction <add>, %64, %cst_32 [1] : vector<16x128xf32> to vector<16xf32>
    %66 = vector.shape_cast %65 : vector<16xf32> to vector<16x1xf32>
    %cst_33 = arith.constant 1.280000e+02 : f32
    %67 = vector.broadcast %cst_33 : f32 to vector<16x1xf32>
    %68 = arith.divf %66, %67 : vector<16x1xf32>
    %69 = vector.broadcast %61 : vector<16x1xf32> to vector<16x128xf32>
    %70 = arith.subf %53, %69 : vector<16x128xf32>
    %cst_34 = arith.constant 9.99999996E-13 : f32
    %71 = vector.broadcast %cst_34 : f32 to vector<16x1xf32>
    %72 = arith.addf %68, %71 : vector<16x1xf32>
    %73 = math.rsqrt %72 : vector<16x1xf32>
    %74 = vector.broadcast %73 : vector<16x1xf32> to vector<16x128xf32>
    %75 = arith.mulf %70, %74 : vector<16x128xf32>
    %76 = vector.broadcast %55 : vector<1x128xf32> to vector<16x128xf32>
    %77 = arith.mulf %75, %76 : vector<16x128xf32>
    %78 = vector.broadcast %57 : vector<1x128xf32> to vector<16x128xf32>
    %79 = arith.addf %77, %78 : vector<16x128xf32>
    %80 = arith.truncf %79 : vector<16x128xf32> to vector<16x128xbf16>
    %c0_35 = arith.constant 0 : index
    %c0_36 = arith.constant 0 : index
    %c0_37 = arith.constant 0 : index
    %81 = vector.load %arg10[%c0_35, %c0_36, %c0_37] : memref<2x128x256xbf16, #tpu.memory_space<vmem>>, vector<1x128x256xbf16>
    %82 = vector.shape_cast %81 : vector<1x128x256xbf16> to vector<128x256xbf16>
    %cst_38 = arith.constant dense<0.000000e+00> : vector<16x256xf32>
    %83 = tpu.matmul %80, %82, %cst_38 {dimension_numbers = #tpu.dot_dimension_numbers<[1], [0], [0], [1], [0, 0, 1, 1], [], []>} : vector<16x128xbf16>, vector<128x256xbf16>, vector<16x256xf32> -> vector<16x256xf32>
    %c0_39 = arith.constant 0 : index
    %c0_40 = arith.constant 0 : index
    %c0_41 = arith.constant 0 : index
    %84 = vector.load %arg11[%c0_39, %c0_40, %c0_41] : memref<2x1x256xf32, #tpu.memory_space<vmem>>, vector<1x1x256xf32>
    %85 = vector.shape_cast %84 : vector<1x1x256xf32> to vector<1x256xf32>
    %86 = vector.broadcast %85 : vector<1x256xf32> to vector<16x256xf32>
    %87 = arith.addf %83, %86 : vector<16x256xf32>
    %cst_42 = arith.constant 5.000000e-01 : f32
    %88 = vector.broadcast %cst_42 : f32 to vector<16x256xf32>
    %89 = arith.mulf %88, %87 : vector<16x256xf32>
    %cst_43 = arith.constant 4.471500e-02 : f32
    %90 = vector.broadcast %cst_43 : f32 to vector<16x256xf32>
    %91 = arith.mulf %90, %87 : vector<16x256xf32>
    %92 = arith.mulf %91, %87 : vector<16x256xf32>
    %93 = arith.mulf %92, %87 : vector<16x256xf32>
    %94 = arith.addf %87, %93 : vector<16x256xf32>
    %cst_44 = arith.constant 0.797884583 : f32
    %95 = vector.broadcast %cst_44 : f32 to vector<16x256xf32>
    %96 = arith.mulf %95, %94 : vector<16x256xf32>
    %97 = math.tanh %96 : vector<16x256xf32>
    %cst_45 = arith.constant 1.000000e+00 : f32
    %98 = vector.broadcast %cst_45 : f32 to vector<16x256xf32>
    %99 = arith.addf %98, %97 : vector<16x256xf32>
    %100 = arith.mulf %89, %99 : vector<16x256xf32>
    %101 = arith.truncf %100 : vector<16x256xf32> to vector<16x256xbf16>
    %c0_46 = arith.constant 0 : index
    %c0_47 = arith.constant 0 : index
    %c0_48 = arith.constant 0 : index
    %102 = vector.load %arg12[%c0_46, %c0_47, %c0_48] : memref<2x256x128xbf16, #tpu.memory_space<vmem>>, vector<1x256x128xbf16>
    %103 = vector.shape_cast %102 : vector<1x256x128xbf16> to vector<256x128xbf16>
    %cst_49 = arith.constant dense<0.000000e+00> : vector<16x128xf32>
    %104 = tpu.matmul %101, %103, %cst_49 {dimension_numbers = #tpu.dot_dimension_numbers<[1], [0], [0], [1], [0, 0, 1, 1], [], []>} : vector<16x256xbf16>, vector<256x128xbf16>, vector<16x128xf32> -> vector<16x128xf32>
    %c0_50 = arith.constant 0 : index
    %c0_51 = arith.constant 0 : index
    %c0_52 = arith.constant 0 : index
    %105 = vector.load %arg13[%c0_50, %c0_51, %c0_52] : memref<2x1x128xf32, #tpu.memory_space<vmem>>, vector<1x1x128xf32>
    %106 = vector.shape_cast %105 : vector<1x1x128xf32> to vector<1x128xf32>
    %107 = vector.broadcast %106 : vector<1x128xf32> to vector<16x128xf32>
    %108 = arith.addf %104, %107 : vector<16x128xf32>
    %109 = arith.addf %79, %108 : vector<16x128xf32>
    %c0_53 = arith.constant 0 : index
    %c0_54 = arith.constant 0 : index
    %c0_55 = arith.constant 0 : index
    %110 = vector.load %arg14[%c0_53, %c0_54, %c0_55] : memref<2x1x128xf32, #tpu.memory_space<vmem>>, vector<1x1x128xf32>
    %111 = vector.shape_cast %110 : vector<1x1x128xf32> to vector<1x128xf32>
    %c0_56 = arith.constant 0 : index
    %c0_57 = arith.constant 0 : index
    %c0_58 = arith.constant 0 : index
    %112 = vector.load %arg15[%c0_56, %c0_57, %c0_58] : memref<2x1x128xf32, #tpu.memory_space<vmem>>, vector<1x1x128xf32>
    %113 = vector.shape_cast %112 : vector<1x1x128xf32> to vector<1x128xf32>
    %cst_59 = arith.constant dense<0.000000e+00> : vector<16xf32>
    %114 = vector.multi_reduction <add>, %109, %cst_59 [1] : vector<16x128xf32> to vector<16xf32>
    %115 = vector.shape_cast %114 : vector<16xf32> to vector<16x1xf32>
    %cst_60 = arith.constant 1.280000e+02 : f32
    %116 = vector.broadcast %cst_60 : f32 to vector<16x1xf32>
    %117 = arith.divf %115, %116 : vector<16x1xf32>
    %118 = vector.broadcast %117 : vector<16x1xf32> to vector<16x128xf32>
    %119 = arith.subf %109, %118 : vector<16x128xf32>
    %120 = arith.mulf %119, %119 : vector<16x128xf32>
    %cst_61 = arith.constant dense<0.000000e+00> : vector<16xf32>
    %121 = vector.multi_reduction <add>, %120, %cst_61 [1] : vector<16x128xf32> to vector<16xf32>
    %122 = vector.shape_cast %121 : vector<16xf32> to vector<16x1xf32>
    %cst_62 = arith.constant 1.280000e+02 : f32
    %123 = vector.broadcast %cst_62 : f32 to vector<16x1xf32>
    %124 = arith.divf %122, %123 : vector<16x1xf32>
    %125 = vector.broadcast %117 : vector<16x1xf32> to vector<16x128xf32>
    %126 = arith.subf %109, %125 : vector<16x128xf32>
    %cst_63 = arith.constant 9.99999996E-13 : f32
    %127 = vector.broadcast %cst_63 : f32 to vector<16x1xf32>
    %128 = arith.addf %124, %127 : vector<16x1xf32>
    %129 = math.rsqrt %128 : vector<16x1xf32>
    %130 = vector.broadcast %129 : vector<16x1xf32> to vector<16x128xf32>
    %131 = arith.mulf %126, %130 : vector<16x128xf32>
    %132 = vector.broadcast %111 : vector<1x128xf32> to vector<16x128xf32>
    %133 = arith.mulf %131, %132 : vector<16x128xf32>
    %134 = vector.broadcast %113 : vector<1x128xf32> to vector<16x128xf32>
    %135 = arith.addf %133, %134 : vector<16x128xf32>
    %136 = arith.truncf %135 : vector<16x128xf32> to vector<16x128xbf16>
    %c1_64 = arith.constant 1 : index
    %c0_65 = arith.constant 0 : index
    %c0_66 = arith.constant 0 : index
    %137 = vector.load %arg4[%c1_64, %c0_65, %c0_66] : memref<2x128x384xbf16, #tpu.memory_space<vmem>>, vector<1x128x384xbf16>
    %138 = vector.shape_cast %137 : vector<1x128x384xbf16> to vector<128x384xbf16>
    %cst_67 = arith.constant dense<0.000000e+00> : vector<16x384xf32>
    %139 = tpu.matmul %136, %138, %cst_67 {dimension_numbers = #tpu.dot_dimension_numbers<[1], [0], [0], [1], [0, 0, 1, 1], [], []>} : vector<16x128xbf16>, vector<128x384xbf16>, vector<16x384xf32> -> vector<16x384xf32>
    %c1_68 = arith.constant 1 : index
    %c0_69 = arith.constant 0 : index
    %c0_70 = arith.constant 0 : index
    %140 = vector.load %arg5[%c1_68, %c0_69, %c0_70] : memref<2x1x384xf32, #tpu.memory_space<vmem>>, vector<1x1x384xf32>
    %141 = vector.shape_cast %140 : vector<1x1x384xf32> to vector<1x384xf32>
    %142 = vector.broadcast %141 : vector<1x384xf32> to vector<16x384xf32>
    %143 = arith.addf %139, %142 : vector<16x384xf32>
    %144 = vector.extract_strided_slice %143 {offsets = [0, 0], sizes = [16, 128], strides = [1, 1]} : vector<16x384xf32> to vector<16x128xf32>
    %145 = vector.extract_strided_slice %143 {offsets = [0, 128], sizes = [16, 128], strides = [1, 1]} : vector<16x384xf32> to vector<16x128xf32>
    %146 = vector.extract_strided_slice %143 {offsets = [0, 256], sizes = [16, 128], strides = [1, 1]} : vector<16x384xf32> to vector<16x128xf32>
    %147 = vector.broadcast %2 : vector<1x128xf32> to vector<16x128xf32>
    %148 = arith.mulf %144, %147 : vector<16x128xf32>
    %149 = vector.broadcast %3 : vector<1x128xf32> to vector<16x128xf32>
    %150 = arith.mulf %144, %149 : vector<16x128xf32>
    %151 = tpu.concatenate %148, %150 in 0 : vector<16x128xf32>, vector<16x128xf32> -> vector<32x128xf32>
    %152 = arith.truncf %151 : vector<32x128xf32> to vector<32x128xbf16>
    %153 = arith.truncf %145 : vector<16x128xf32> to vector<16x128xbf16>
    %cst_71 = arith.constant dense<0.000000e+00> : vector<32x16xf32>
    %154 = tpu.matmul %152, %153, %cst_71 {dimension_numbers = #tpu.dot_dimension_numbers<[1], [1], [0], [0], [0, 0, 1, 0], [], []>} : vector<32x128xbf16>, vector<16x128xbf16>, vector<32x16xf32> -> vector<32x16xf32>
    %cst_72 = arith.constant 1.250000e-01 : f32
    %155 = vector.broadcast %cst_72 : f32 to vector<32x16xf32>
    %156 = arith.mulf %154, %155 : vector<32x16xf32>
    %157 = arith.addf %156, %1 : vector<32x16xf32>
    %cst_73 = arith.constant dense<0xFF800000> : vector<32xf32>
    %158 = vector.multi_reduction <maximumf>, %157, %cst_73 [1] : vector<32x16xf32> to vector<32xf32>
    %159 = vector.shape_cast %158 : vector<32xf32> to vector<32x1xf32>
    %160 = vector.broadcast %159 : vector<32x1xf32> to vector<32x16xf32>
    %161 = arith.subf %157, %160 : vector<32x16xf32>
    %162 = math.exp %161 : vector<32x16xf32>
    %cst_74 = arith.constant dense<0.000000e+00> : vector<32xf32>
    %163 = vector.multi_reduction <add>, %162, %cst_74 [1] : vector<32x16xf32> to vector<32xf32>
    %164 = vector.shape_cast %163 : vector<32xf32> to vector<32x1xf32>
    %165 = vector.broadcast %164 : vector<32x1xf32> to vector<32x16xf32>
    %166 = arith.divf %162, %165 : vector<32x16xf32>
    %167 = arith.truncf %166 : vector<32x16xf32> to vector<32x16xbf16>
    %168 = arith.truncf %146 : vector<16x128xf32> to vector<16x128xbf16>
    %cst_75 = arith.constant dense<0.000000e+00> : vector<32x128xf32>
    %169 = tpu.matmul %167, %168, %cst_75 {dimension_numbers = #tpu.dot_dimension_numbers<[1], [0], [0], [1], [0, 0, 1, 1], [], []>} : vector<32x16xbf16>, vector<16x128xbf16>, vector<32x128xf32> -> vector<32x128xf32>
    %170 = vector.extract_strided_slice %169 {offsets = [0, 0], sizes = [16, 128], strides = [1, 1]} : vector<32x128xf32> to vector<16x128xf32>
    %171 = vector.broadcast %2 : vector<1x128xf32> to vector<16x128xf32>
    %172 = arith.mulf %170, %171 : vector<16x128xf32>
    %173 = vector.extract_strided_slice %169 {offsets = [16, 0], sizes = [16, 128], strides = [1, 1]} : vector<32x128xf32> to vector<16x128xf32>
    %174 = vector.broadcast %3 : vector<1x128xf32> to vector<16x128xf32>
    %175 = arith.mulf %173, %174 : vector<16x128xf32>
    %176 = arith.addf %172, %175 : vector<16x128xf32>
    %177 = arith.truncf %176 : vector<16x128xf32> to vector<16x128xbf16>
    %c1_76 = arith.constant 1 : index
    %c0_77 = arith.constant 0 : index
    %c0_78 = arith.constant 0 : index
    %178 = vector.load %arg6[%c1_76, %c0_77, %c0_78] : memref<2x128x128xbf16, #tpu.memory_space<vmem>>, vector<1x128x128xbf16>
    %179 = vector.shape_cast %178 : vector<1x128x128xbf16> to vector<128x128xbf16>
    %cst_79 = arith.constant dense<0.000000e+00> : vector<16x128xf32>
    %180 = tpu.matmul %177, %179, %cst_79 {dimension_numbers = #tpu.dot_dimension_numbers<[1], [0], [0], [1], [0, 0, 1, 1], [], []>} : vector<16x128xbf16>, vector<128x128xbf16>, vector<16x128xf32> -> vector<16x128xf32>
    %c1_80 = arith.constant 1 : index
    %c0_81 = arith.constant 0 : index
    %c0_82 = arith.constant 0 : index
    %181 = vector.load %arg7[%c1_80, %c0_81, %c0_82] : memref<2x1x128xf32, #tpu.memory_space<vmem>>, vector<1x1x128xf32>
    %182 = vector.shape_cast %181 : vector<1x1x128xf32> to vector<1x128xf32>
    %183 = vector.broadcast %182 : vector<1x128xf32> to vector<16x128xf32>
    %184 = arith.addf %180, %183 : vector<16x128xf32>
    %185 = arith.addf %135, %184 : vector<16x128xf32>
    %c1_83 = arith.constant 1 : index
    %c0_84 = arith.constant 0 : index
    %c0_85 = arith.constant 0 : index
    %186 = vector.load %arg8[%c1_83, %c0_84, %c0_85] : memref<2x1x128xf32, #tpu.memory_space<vmem>>, vector<1x1x128xf32>
    %187 = vector.shape_cast %186 : vector<1x1x128xf32> to vector<1x128xf32>
    %c1_86 = arith.constant 1 : index
    %c0_87 = arith.constant 0 : index
    %c0_88 = arith.constant 0 : index
    %188 = vector.load %arg9[%c1_86, %c0_87, %c0_88] : memref<2x1x128xf32, #tpu.memory_space<vmem>>, vector<1x1x128xf32>
    %189 = vector.shape_cast %188 : vector<1x1x128xf32> to vector<1x128xf32>
    %cst_89 = arith.constant dense<0.000000e+00> : vector<16xf32>
    %190 = vector.multi_reduction <add>, %185, %cst_89 [1] : vector<16x128xf32> to vector<16xf32>
    %191 = vector.shape_cast %190 : vector<16xf32> to vector<16x1xf32>
    %cst_90 = arith.constant 1.280000e+02 : f32
    %192 = vector.broadcast %cst_90 : f32 to vector<16x1xf32>
    %193 = arith.divf %191, %192 : vector<16x1xf32>
    %194 = vector.broadcast %193 : vector<16x1xf32> to vector<16x128xf32>
    %195 = arith.subf %185, %194 : vector<16x128xf32>
    %196 = arith.mulf %195, %195 : vector<16x128xf32>
    %cst_91 = arith.constant dense<0.000000e+00> : vector<16xf32>
    %197 = vector.multi_reduction <add>, %196, %cst_91 [1] : vector<16x128xf32> to vector<16xf32>
    %198 = vector.shape_cast %197 : vector<16xf32> to vector<16x1xf32>
    %cst_92 = arith.constant 1.280000e+02 : f32
    %199 = vector.broadcast %cst_92 : f32 to vector<16x1xf32>
    %200 = arith.divf %198, %199 : vector<16x1xf32>
    %201 = vector.broadcast %193 : vector<16x1xf32> to vector<16x128xf32>
    %202 = arith.subf %185, %201 : vector<16x128xf32>
    %cst_93 = arith.constant 9.99999996E-13 : f32
    %203 = vector.broadcast %cst_93 : f32 to vector<16x1xf32>
    %204 = arith.addf %200, %203 : vector<16x1xf32>
    %205 = math.rsqrt %204 : vector<16x1xf32>
    %206 = vector.broadcast %205 : vector<16x1xf32> to vector<16x128xf32>
    %207 = arith.mulf %202, %206 : vector<16x128xf32>
    %208 = vector.broadcast %187 : vector<1x128xf32> to vector<16x128xf32>
    %209 = arith.mulf %207, %208 : vector<16x128xf32>
    %210 = vector.broadcast %189 : vector<1x128xf32> to vector<16x128xf32>
    %211 = arith.addf %209, %210 : vector<16x128xf32>
    %212 = arith.truncf %211 : vector<16x128xf32> to vector<16x128xbf16>
    %c1_94 = arith.constant 1 : index
    %c0_95 = arith.constant 0 : index
    %c0_96 = arith.constant 0 : index
    %213 = vector.load %arg10[%c1_94, %c0_95, %c0_96] : memref<2x128x256xbf16, #tpu.memory_space<vmem>>, vector<1x128x256xbf16>
    %214 = vector.shape_cast %213 : vector<1x128x256xbf16> to vector<128x256xbf16>
    %cst_97 = arith.constant dense<0.000000e+00> : vector<16x256xf32>
    %215 = tpu.matmul %212, %214, %cst_97 {dimension_numbers = #tpu.dot_dimension_numbers<[1], [0], [0], [1], [0, 0, 1, 1], [], []>} : vector<16x128xbf16>, vector<128x256xbf16>, vector<16x256xf32> -> vector<16x256xf32>
    %c1_98 = arith.constant 1 : index
    %c0_99 = arith.constant 0 : index
    %c0_100 = arith.constant 0 : index
    %216 = vector.load %arg11[%c1_98, %c0_99, %c0_100] : memref<2x1x256xf32, #tpu.memory_space<vmem>>, vector<1x1x256xf32>
    %217 = vector.shape_cast %216 : vector<1x1x256xf32> to vector<1x256xf32>
    %218 = vector.broadcast %217 : vector<1x256xf32> to vector<16x256xf32>
    %219 = arith.addf %215, %218 : vector<16x256xf32>
    %cst_101 = arith.constant 5.000000e-01 : f32
    %220 = vector.broadcast %cst_101 : f32 to vector<16x256xf32>
    %221 = arith.mulf %220, %219 : vector<16x256xf32>
    %cst_102 = arith.constant 4.471500e-02 : f32
    %222 = vector.broadcast %cst_102 : f32 to vector<16x256xf32>
    %223 = arith.mulf %222, %219 : vector<16x256xf32>
    %224 = arith.mulf %223, %219 : vector<16x256xf32>
    %225 = arith.mulf %224, %219 : vector<16x256xf32>
    %226 = arith.addf %219, %225 : vector<16x256xf32>
    %cst_103 = arith.constant 0.797884583 : f32
    %227 = vector.broadcast %cst_103 : f32 to vector<16x256xf32>
    %228 = arith.mulf %227, %226 : vector<16x256xf32>
    %229 = math.tanh %228 : vector<16x256xf32>
    %cst_104 = arith.constant 1.000000e+00 : f32
    %230 = vector.broadcast %cst_104 : f32 to vector<16x256xf32>
    %231 = arith.addf %230, %229 : vector<16x256xf32>
    %232 = arith.mulf %221, %231 : vector<16x256xf32>
    %233 = arith.truncf %232 : vector<16x256xf32> to vector<16x256xbf16>
    %c1_105 = arith.constant 1 : index
    %c0_106 = arith.constant 0 : index
    %c0_107 = arith.constant 0 : index
    %234 = vector.load %arg12[%c1_105, %c0_106, %c0_107] : memref<2x256x128xbf16, #tpu.memory_space<vmem>>, vector<1x256x128xbf16>
    %235 = vector.shape_cast %234 : vector<1x256x128xbf16> to vector<256x128xbf16>
    %cst_108 = arith.constant dense<0.000000e+00> : vector<16x128xf32>
    %236 = tpu.matmul %233, %235, %cst_108 {dimension_numbers = #tpu.dot_dimension_numbers<[1], [0], [0], [1], [0, 0, 1, 1], [], []>} : vector<16x256xbf16>, vector<256x128xbf16>, vector<16x128xf32> -> vector<16x128xf32>
    %c1_109 = arith.constant 1 : index
    %c0_110 = arith.constant 0 : index
    %c0_111 = arith.constant 0 : index
    %237 = vector.load %arg13[%c1_109, %c0_110, %c0_111] : memref<2x1x128xf32, #tpu.memory_space<vmem>>, vector<1x1x128xf32>
    %238 = vector.shape_cast %237 : vector<1x1x128xf32> to vector<1x128xf32>
    %239 = vector.broadcast %238 : vector<1x128xf32> to vector<16x128xf32>
    %240 = arith.addf %236, %239 : vector<16x128xf32>
    %241 = arith.addf %211, %240 : vector<16x128xf32>
    %c1_112 = arith.constant 1 : index
    %c0_113 = arith.constant 0 : index
    %c0_114 = arith.constant 0 : index
    %242 = vector.load %arg14[%c1_112, %c0_113, %c0_114] : memref<2x1x128xf32, #tpu.memory_space<vmem>>, vector<1x1x128xf32>
    %243 = vector.shape_cast %242 : vector<1x1x128xf32> to vector<1x128xf32>
    %c1_115 = arith.constant 1 : index
    %c0_116 = arith.constant 0 : index
    %c0_117 = arith.constant 0 : index
    %244 = vector.load %arg15[%c1_115, %c0_116, %c0_117] : memref<2x1x128xf32, #tpu.memory_space<vmem>>, vector<1x1x128xf32>
    %245 = vector.shape_cast %244 : vector<1x1x128xf32> to vector<1x128xf32>
    %cst_118 = arith.constant dense<0.000000e+00> : vector<16xf32>
    %246 = vector.multi_reduction <add>, %241, %cst_118 [1] : vector<16x128xf32> to vector<16xf32>
    %247 = vector.shape_cast %246 : vector<16xf32> to vector<16x1xf32>
    %cst_119 = arith.constant 1.280000e+02 : f32
    %248 = vector.broadcast %cst_119 : f32 to vector<16x1xf32>
    %249 = arith.divf %247, %248 : vector<16x1xf32>
    %250 = vector.broadcast %249 : vector<16x1xf32> to vector<16x128xf32>
    %251 = arith.subf %241, %250 : vector<16x128xf32>
    %252 = arith.mulf %251, %251 : vector<16x128xf32>
    %cst_120 = arith.constant dense<0.000000e+00> : vector<16xf32>
    %253 = vector.multi_reduction <add>, %252, %cst_120 [1] : vector<16x128xf32> to vector<16xf32>
    %254 = vector.shape_cast %253 : vector<16xf32> to vector<16x1xf32>
    %cst_121 = arith.constant 1.280000e+02 : f32
    %255 = vector.broadcast %cst_121 : f32 to vector<16x1xf32>
    %256 = arith.divf %254, %255 : vector<16x1xf32>
    %257 = vector.broadcast %249 : vector<16x1xf32> to vector<16x128xf32>
    %258 = arith.subf %241, %257 : vector<16x128xf32>
    %cst_122 = arith.constant 9.99999996E-13 : f32
    %259 = vector.broadcast %cst_122 : f32 to vector<16x1xf32>
    %260 = arith.addf %256, %259 : vector<16x1xf32>
    %261 = math.rsqrt %260 : vector<16x1xf32>
    %262 = vector.broadcast %261 : vector<16x1xf32> to vector<16x128xf32>
    %263 = arith.mulf %258, %262 : vector<16x128xf32>
    %264 = vector.broadcast %243 : vector<1x128xf32> to vector<16x128xf32>
    %265 = arith.mulf %263, %264 : vector<16x128xf32>
    %266 = vector.broadcast %245 : vector<1x128xf32> to vector<16x128xf32>
    %267 = arith.addf %265, %266 : vector<16x128xf32>
    %c0_123 = arith.constant 0 : index
    %c0_124 = arith.constant 0 : index
    %268 = vector.load %arg16[%c0_123, %c0_124] : memref<16x128xf32, #tpu.memory_space<vmem>>, vector<16x128xf32>
    tpu.vector_store %arg16[%c0_123, %c0_124], %267 {strides = array<i32>} : memref<16x128xf32, #tpu.memory_space<vmem>>, vector<16x128xf32>,
    return
  }
  func.func @transform_0(%arg0: i32) -> (i32, i32) {
    %c0_i32 = arith.constant 0 : i32
    %c0_i32_0 = arith.constant 0 : i32
    %c0_i32_1 = arith.constant 0 : i32
    return %c0_i32, %c0_i32_0 : i32, i32
  }
  func.func @transform_1(%arg0: i32) -> (i32, i32) {
    %c0_i32 = arith.constant 0 : i32
    %c0_i32_0 = arith.constant 0 : i32
    %c0_i32_1 = arith.constant 0 : i32
    return %c0_i32, %c0_i32_0 : i32, i32
  }
  func.func @transform_2(%arg0: i32) -> (i32, i32) {
    %c0_i32 = arith.constant 0 : i32
    %c0_i32_0 = arith.constant 0 : i32
    %c0_i32_1 = arith.constant 0 : i32
    return %c0_i32, %c0_i32_0 : i32, i32
  }
  func.func @transform_3(%arg0: i32) -> (i32, i32, i32) {
    %c0_i32 = arith.constant 0 : i32
    %c0_i32_0 = arith.constant 0 : i32
    %c0_i32_1 = arith.constant 0 : i32
    %c0_i32_2 = arith.constant 0 : i32
    return %c0_i32, %c0_i32_0, %c0_i32_1 : i32, i32, i32
  }
  func.func @transform_4(%arg0: i32) -> (i32, i32, i32) {
    %c0_i32 = arith.constant 0 : i32
    %c0_i32_0 = arith.constant 0 : i32
    %c0_i32_1 = arith.constant 0 : i32
    %c0_i32_2 = arith.constant 0 : i32
    return %c0_i32, %c0_i32_0, %c0_i32_1 : i32, i32, i32
  }
  func.func @transform_5(%arg0: i32) -> (i32, i32, i32) {
    %c0_i32 = arith.constant 0 : i32
    %c0_i32_0 = arith.constant 0 : i32
    %c0_i32_1 = arith.constant 0 : i32
    %c0_i32_2 = arith.constant 0 : i32
    return %c0_i32, %c0_i32_0, %c0_i32_1 : i32, i32, i32
  }
  func.func @transform_6(%arg0: i32) -> (i32, i32, i32) {
    %c0_i32 = arith.constant 0 : i32
    %c0_i32_0 = arith.constant 0 : i32
    %c0_i32_1 = arith.constant 0 : i32
    %c0_i32_2 = arith.constant 0 : i32
    return %c0_i32, %c0_i32_0, %c0_i32_1 : i32, i32, i32
  }
  func.func @transform_7(%arg0: i32) -> (i32, i32, i32) {
    %c0_i32 = arith.constant 0 : i32
    %c0_i32_0 = arith.constant 0 : i32
    %c0_i32_1 = arith.constant 0 : i32
    %c0_i32_2 = arith.constant 0 : i32
    return %c0_i32, %c0_i32_0, %c0_i32_1 : i32, i32, i32
  }
  func.func @transform_8(%arg0: i32) -> (i32, i32, i32) {
    %c0_i32 = arith.constant 0 : i32
    %c0_i32_0 = arith.constant 0 : i32
    %c0_i32_1 = arith.constant 0 : i32
    %c0_i32_2 = arith.constant 0 : i32
    return %c0_i32, %c0_i32_0, %c0_i32_1 : i32, i32, i32
  }
  func.func @transform_9(%arg0: i32) -> (i32, i32, i32) {
    %c0_i32 = arith.constant 0 : i32
    %c0_i32_0 = arith.constant 0 : i32
    %c0_i32_1 = arith.constant 0 : i32
    %c0_i32_2 = arith.constant 0 : i32
    return %c0_i32, %c0_i32_0, %c0_i32_1 : i32, i32, i32
  }
  func.func @transform_10(%arg0: i32) -> (i32, i32, i32) {
    %c0_i32 = arith.constant 0 : i32
    %c0_i32_0 = arith.constant 0 : i32
    %c0_i32_1 = arith.constant 0 : i32
    %c0_i32_2 = arith.constant 0 : i32
    return %c0_i32, %c0_i32_0, %c0_i32_1 : i32, i32, i32
  }
  func.func @transform_11(%arg0: i32) -> (i32, i32, i32) {
    %c0_i32 = arith.constant 0 : i32
    %c0_i32_0 = arith.constant 0 : i32
    %c0_i32_1 = arith.constant 0 : i32
    %c0_i32_2 = arith.constant 0 : i32
    return %c0_i32, %c0_i32_0, %c0_i32_1 : i32, i32, i32
  }
  func.func @transform_12(%arg0: i32) -> (i32, i32, i32) {
    %c0_i32 = arith.constant 0 : i32
    %c0_i32_0 = arith.constant 0 : i32
    %c0_i32_1 = arith.constant 0 : i32
    %c0_i32_2 = arith.constant 0 : i32
    return %c0_i32, %c0_i32_0, %c0_i32_1 : i32, i32, i32
  }
  func.func @transform_13(%arg0: i32) -> (i32, i32, i32) {
    %c0_i32 = arith.constant 0 : i32
    %c0_i32_0 = arith.constant 0 : i32
    %c0_i32_1 = arith.constant 0 : i32
    %c0_i32_2 = arith.constant 0 : i32
    return %c0_i32, %c0_i32_0, %c0_i32_1 : i32, i32, i32
  }
  func.func @transform_14(%arg0: i32) -> (i32, i32, i32) {
    %c0_i32 = arith.constant 0 : i32
    %c0_i32_0 = arith.constant 0 : i32
    %c0_i32_1 = arith.constant 0 : i32
    %c0_i32_2 = arith.constant 0 : i32
    return %c0_i32, %c0_i32_0, %c0_i32_1 : i32, i32, i32
  }
  func.func @transform_15(%arg0: i32) -> (i32, i32) {
    %c0_i32 = arith.constant 0 : i32
    %c0_i32_0 = arith.constant 0 : i32
    %c0_i32_1 = arith.constant 0 : i32
    return %c0_i32, %c0_i32_0 : i32, i32
  }
}

</mosaic_0001>

<bundles_post_ra>
// kernel: tile.6
= control target key start
LH: loop header
LB: loop body
LE: loop exit
PB: predicated region body
PF: predicated region fallthrough
CT: control target
= control target key end

     0   :  { %s22_s0 = inlined_call_operand.vmem [shape: s32[16], index: 0, kind: input, shape index: {}]   ;;  %s23_s1 = inlined_call_operand.vmem [shape: s32[2,16], index: 1, kind: output, shape index: {}]  }
   0x1   :  { %v4_v0 = vld [vmem:[%s22_s0] ss:$0 sm:$0xff] }
   0x2   :  { %5 = vst [vmem:[%s23_s1] sm:$0x3] %v4_v0 }

// kernel: eq.15
= control target key start
LH: loop header
LB: loop body
LE: loop exit
PB: predicated region body
PF: predicated region fallthrough
CT: control target
= control target key end

     0   :  { %vm7_vm0 = vcmask 130048   ;;  %vm13_vm1 = vcmask 261248   ;;  %s39_s0 = inlined_call_operand.vmem [shape: s32[2,16], index: 0, kind: input, shape index: {}]   ;;  %s40_s1 = inlined_call_operand.vmem [shape: s32[32], index: 1, kind: output, shape index: {}]  }
   0x1   :  { %v4_v0 = vld [vmem:[%s39_s0] sm:$0x3]  ;;  %s22_s0 = smov 16  }
   0x2   :  { %5 = vst [vmem:[#allocation1] sm:$0x3] %v4_v0 }
   0x9   :  { %v10_v1 = vld [vmem:[#allocation1 + $0x1] sm:$0x1]   ;;  %v6_v2 = vld [vmem:[#allocation1] sm:$0x1]  }
   0xa   :  { %11 = vrot.lane.b32.xlu0 %v10_v1, %s22_s0  ;;  %8 = vst.msk [vmem:[#allocation0] sm:$0x1] %vm7_vm0, %v6_v2  }
  0x7c   :  { %v12_v3 = vpop.permute.xlu0 %11  }
  0x7d   :  { %14 = vst.msk [vmem:[#allocation0] sm:$0x1] %vm13_vm1, %v12_v3  }
  0x84   :  { %v18_v4 = vld [vmem:[#allocation0] sm:$0x1] }
  0x85   :  { %20 = vst [vmem:[%s40_s1] sm:$0x1] %v18_v4 }

// kernel: bioclinicalbert_ft_forward.1
= control target key start
LH: loop header
LB: loop body
LE: loop exit
PB: predicated region body
PF: predicated region fallthrough
CT: control target
= control target key end

     0   :  { %20 = vsyncpa [#allocation3], 0  ;;  %s3627_s0 = inlined_call_operand.vmem [shape: f32[16,128], index: 0, kind: input, shape index: {}]   ;;  %s3628_s1 = inlined_call_operand.vmem [shape: f32[32,16], index: 1, kind: input, shape index: {}]   ;;  %s3629_s2 = inlined_call_operand.vmem [shape: f32[2,128], index: 2, kind: input, shape index: {}]   ;;  %s3630_s3 = inlined_call_operand.vmem [shape: bf16[2,128,384], index: 3, kind: input, shape index: {}]   ;;  %s3631_s4 = inlined_call_operand.vmem [shape: f32[2,1,384], index: 4, kind: input, shape index: {}]   ;;  %s3632_s5 = inlined_call_operand.hbm [shape: bf16[2,128,128], index: 5, kind: input, shape index: {}]   ;;  %s3633_s6 = inlined_call_operand.vmem [shape: f32[2,1,128], index: 6, kind: input, shape index: {}]   ;;  %s3634_s7 = inlined_call_operand.hbm [shape: f32[2,1,128], index: 7, kind: input, shape index: {}]   ;;  %s3635_s8 = inlined_call_operand.hbm [shape: f32[2,1,128], index: 8, kind: input, shape index: {}]   ;;  %s3636_s9 = inlined_call_operand.hbm [shape: bf16[2,128,256], index: 9, kind: input, shape index: {}]   ;;  %s3637_s10 = inlined_call_operand.hbm [shape: f32[2,1,256], index: 10, kind: input, shape index: {}]   ;;  %s3638_s11 = inlined_call_operand.hbm [shape: bf16[2,256,128], index: 11, kind: input, shape index: {}]   ;;  %s3639_s12 = inlined_call_operand.hbm [shape: f32[2,1,128], index: 12, kind: input, shape index: {}]   ;;  %s3640_s13 = inlined_call_operand.hbm [shape: f32[2,1,128], index: 13, kind: input, shape index: {}]   ;;  %s3641_s14 = inlined_call_operand.hbm [shape: f32[2,1,128], index: 14, kind: input, shape index: {}]   ;;  %s3642_s15 = inlined_call_operand.vmem [shape: f32[16,128], index: 15, kind: output, shape index: {}]  }
   0x1   :  { %21 = vsyncpa [#allocation5], 0 }
   0x2   :  { %22 = vsyncpa [#allocation8], 0 }
   0x3   :  { %23 = vsyncpa [#allocation11], 0 }
   0x4   :  { %24 = vsyncpa [#allocation14], 0  ;;  %s3038_s18 = smov [#allocation4]   ;;  %s2830_s22 = scalar_lea.hbm %s3634_s7, 32 }
   0x5   :  { %s54_s19 = sshll.u32 %s3038_s18, 4  ;;  %p2831_p0 = scmp.ne.s32.totalorder %s3634_s7, %s2830_s22  ;;  %s55_s19 = int_to_ptr.vmem [resolvable:$true] %s54_s19 }
   0x6   :  { %p2834_p1 = scmp.lt.u32.totalorder %s2830_s22, %s3634_s7 }
   0x8   :  { %p2836_p2 = pnand %p2834_p1, %p2831_p0 }
   0xa   :  { %2839 = shalt.err (!%p2836_p2)
}
   0xb   :  { %s2840_s27 = scalar_lea.vmem %s55_s19, 32  ;;  %p2845_p4 = scmp.lt.s32.totalorder %s55_s19, %s55_s19 }
   0xc   :  { %p2841_p3 = scmp.ne.s32.totalorder %s55_s19, %s2840_s27  ;;  %p2846_p5 = scmp.lt.s32.totalorder %s2840_s27, %s2840_s27 }
   0xe   :  { %p2847_p6 = por %p2846_p5, %p2845_p4 }
  0x10   :  { %p2848_p7 = pnand %p2847_p6, %p2841_p3 }
  0x12   :  { %2851 = shalt.err (!%p2848_p7)
}
  0x13   :  { %s3643_s28 = smov 16   ;;  %s3645_s29 = smov 1  }
  0x14   :  { %60 = dma.hbm_to_vmem [thread:$0]  %s3634_s7, 32, %s55_s19, [#allocation5], %s3643_s28, %s3643_s28, %s3645_s29  }
  0x15   :  { %s3041_s17 = smov [#allocation7]   ;;  %s2852_s22 = scalar_lea.hbm %s3636_s9, 4096 }
  0x16   :  { %s78_s18 = sshll.u32 %s3041_s17, 4  ;;  %p2853_p8 = scmp.ne.s32.totalorder %s3636_s9, %s2852_s22  ;;  %s79_s18 = int_to_ptr.vmem [resolvable:$true] %s78_s18 }
  0x17   :  { %p2856_p9 = scmp.lt.u32.totalorder %s2852_s22, %s3636_s9 }
  0x19   :  { %p2858_p10 = pnand %p2856_p9, %p2853_p8 }
  0x1b   :  { %2861 = shalt.err (!%p2858_p10)
}
  0x1c   :  { %s2862_s27 = scalar_lea.vmem %s79_s18, 4096  ;;  %p2867_p12 = scmp.lt.s32.totalorder %s79_s18, %s79_s18 }
  0x1d   :  { %p2863_p11 = scmp.ne.s32.totalorder %s79_s18, %s2862_s27  ;;  %p2868_p13 = scmp.lt.s32.totalorder %s2862_s27, %s2862_s27 }
  0x1f   :  { %p2869_p0 = por %p2868_p13, %p2867_p12 }
  0x21   :  { %p2870_p1 = pnand %p2869_p0, %p2863_p11 }
  0x23   :  { %2873 = shalt.err (!%p2870_p1)
}
  0x24   :  { %s3042_s7 = smov 128   ;;  %s3043_s19 = smov 8  }
  0x25   :  { %84 = dma.hbm_to_vmem [thread:$0]  %s3636_s9, 4096, %s79_s18, [#allocation8], %s3042_s7, %s3042_s7, %s3043_s19  }
  0x26   :  { %s3044_s17 = smov [#allocation10]   ;;  %s3045_s21 = smov [#allocation13]  }
  0x27   :  { %s102_s20 = sshll.u32 %s3044_s17, 4  ;;  %s126_s23 = sshll.u32 %s3045_s21, 4  ;;  %s103_s20 = int_to_ptr.vmem [resolvable:$true] %s102_s20  ;;  %s3165_s23 = int_to_ptr.vmem [resolvable:$true] %s126_s23 }
  0x28   :  { %s2874_s25 = scalar_lea.hbm %s3638_s11, 4096 }
  0x29   :  { %p2875_p2 = scmp.ne.s32.totalorder %s3638_s11, %s2874_s25  ;;  %p2878_p3 = scmp.lt.u32.totalorder %s2874_s25, %s3638_s11 }
  0x2b   :  { %p2880_p4 = pnand %p2878_p3, %p2875_p2 }
  0x2d   :  { %2883 = shalt.err (!%p2880_p4)
}
  0x2e   :  { %s2884_s9 = scalar_lea.vmem %s103_s20, 4096  ;;  %p2889_p6 = scmp.lt.s32.totalorder %s103_s20, %s103_s20 }
  0x2f   :  { %p2885_p5 = scmp.ne.s32.totalorder %s103_s20, %s2884_s9  ;;  %p2890_p7 = scmp.lt.s32.totalorder %s2884_s9, %s2884_s9 }
  0x31   :  { %p2891_p8 = por %p2890_p7, %p2889_p6 }
  0x33   :  { %p2892_p9 = pnand %p2891_p8, %p2885_p5 }
  0x35   :  { %2895 = shalt.err (!%p2892_p9)
}
  0x36   :  { %s3046_s18 = smov 64   ;;  %s3047_s7 = smov 4  }
  0x37   :  { %108 = dma.hbm_to_vmem [thread:$0]  %s3638_s11, 4096, %s103_s20, [#allocation11], %s3046_s18, %s3046_s18, %s3047_s7  }
  0x38   :  { %s2896_s16 = scalar_lea.hbm %s3640_s13, 32 }
  0x39   :  { %p2897_p10 = scmp.ne.s32.totalorder %s3640_s13, %s2896_s16  ;;  %p2900_p11 = scmp.lt.u32.totalorder %s2896_s16, %s3640_s13 }
  0x3b   :  { %p2902_p12 = pnand %p2900_p11, %p2897_p10 }
  0x3d   :  { %2905 = shalt.err (!%p2902_p12)
}
  0x3e   :  { %s2906_s25 = scalar_lea.vmem %s3165_s23, 32  ;;  %p2911_p0 = scmp.lt.s32.totalorder %s3165_s23, %s3165_s23 }
  0x3f   :  { %p2907_p13 = scmp.ne.s32.totalorder %s3165_s23, %s2906_s25  ;;  %p2912_p1 = scmp.lt.s32.totalorder %s2906_s25, %s2906_s25 }
  0x41   :  { %p2913_p2 = por %p2912_p1, %p2911_p0 }
  0x43   :  { %p2914_p3 = pnand %p2913_p2, %p2907_p13 }
  0x45   :  { %2917 = shalt.err (!%p2914_p3)
}
  0x46   :  { %s3647_s11 = smov 1   ;;  %s3648_s20 = smov 16  }
  0x47   :  { %132 = dma.hbm_to_vmem [thread:$0]  %s3640_s13, 32, %s3165_s23, [#allocation14], %s3648_s20, %s3648_s20, %s3647_s11  }
  0x48   :  { %s3048_s9 = smov [#allocation2]   ;;  %s3049_s30 = smov [#allocation6]  }
  0x49   :  { %s40_s19 = sshll.u32 %s3048_s9, 4  ;;  %s66_s28 = sshll.u32 %s3049_s30, 4  ;;  %s41_s19 = int_to_ptr.vmem [resolvable:$true] %s40_s19  ;;  %s3202_s28 = int_to_ptr.vmem [resolvable:$true] %s66_s28 }
  0x4a   :  { %s2918_s17 = scalar_lea.hbm %s3632_s5, 2048 }
  0x4b   :  { %p2919_p4 = scmp.ne.s32.totalorder %s3632_s5, %s2918_s17  ;;  %p2922_p5 = scmp.lt.u32.totalorder %s2918_s17, %s3632_s5 }
  0x4d   :  { %p2924_p6 = pnand %p2922_p5, %p2919_p4 }
  0x4f   :  { %2927 = shalt.err (!%p2924_p6)
}
  0x50   :  { %s2928_s13 = scalar_lea.vmem %s41_s19, 2048  ;;  %p2933_p8 = scmp.lt.s32.totalorder %s41_s19, %s41_s19 }
  0x51   :  { %p2929_p7 = scmp.ne.s32.totalorder %s41_s19, %s2928_s13  ;;  %p2934_p9 = scmp.lt.s32.totalorder %s2928_s13, %s2928_s13 }
  0x53   :  { %p2935_p10 = por %p2934_p9, %p2933_p8 }
  0x55   :  { %p2936_p11 = pnand %p2935_p10, %p2929_p7 }
  0x57   :  { %2939 = shalt.err (!%p2936_p11)
}
  0x58   :  { %46 = dma.hbm_to_vmem [thread:$0]  %s3632_s5, 2048, %s41_s19, [#allocation3], %s3046_s18, %s3046_s18, %s3047_s7  }
  0x59   :  { %s2940_s30 = scalar_lea.hbm %s3635_s8, 32 }
  0x5a   :  { %p2941_p12 = scmp.ne.s32.totalorder %s3635_s8, %s2940_s30  ;;  %p2944_p13 = scmp.lt.u32.totalorder %s2940_s30, %s3635_s8 }
  0x5c   :  { %p2946_p0 = pnand %p2944_p13, %p2941_p12 }
  0x5e   :  { %2949 = shalt.err (!%p2946_p0)
}
  0x5f   :  { %s2950_s22 = scalar_lea.vmem %s3202_s28, 32  ;;  %p2955_p2 = scmp.lt.s32.totalorder %s3202_s28, %s3202_s28 }
  0x60   :  { %p2951_p1 = scmp.ne.s32.totalorder %s3202_s28, %s2950_s22  ;;  %p2956_p3 = scmp.lt.s32.totalorder %s2950_s22, %s2950_s22 }
  0x62   :  { %p2957_p4 = por %p2956_p3, %p2955_p2 }
  0x64   :  { %p2958_p5 = pnand %p2957_p4, %p2951_p1 }
  0x66   :  { %2961 = shalt.err (!%p2958_p5)
}
  0x67   :  { %72 = dma.hbm_to_vmem [thread:$0]  %s3635_s8, 32, %s3202_s28, [#allocation5], %s3648_s20, %s3648_s20, %s3647_s11  }
  0x68   :  { %s3050_s7 = smov [#allocation9]   ;;  %s2962_s13 = scalar_lea.hbm %s3637_s10, 64 }
  0x69   :  { %s90_s19 = sshll.u32 %s3050_s7, 4  ;;  %p2963_p6 = scmp.ne.s32.totalorder %s3637_s10, %s2962_s13  ;;  %s91_s19 = int_to_ptr.vmem [resolvable:$true] %s90_s19 }
  0x6a   :  { %p2966_p7 = scmp.lt.u32.totalorder %s2962_s13, %s3637_s10 }
  0x6c   :  { %p2968_p8 = pnand %p2966_p7, %p2963_p6 }
  0x6e   :  { %2971 = shalt.err (!%p2968_p8)
}
  0x6f   :  { %s2972_s30 = scalar_lea.vmem %s91_s19, 64  ;;  %p2977_p10 = scmp.lt.s32.totalorder %s91_s19, %s91_s19 }
  0x70   :  { %p2973_p9 = scmp.ne.s32.totalorder %s91_s19, %s2972_s30  ;;  %p2978_p11 = scmp.lt.s32.totalorder %s2972_s30, %s2972_s30 }
  0x72   :  { %p2979_p12 = por %p2978_p11, %p2977_p10 }
  0x74   :  { %p2980_p13 = pnand %p2979_p12, %p2973_p9 }
  0x76   :  { %2983 = shalt.err (!%p2980_p13)
}
  0x77   :  { %s3051_s8 = smov 32   ;;  %s3052_s28 = smov 2  }
  0x78   :  { %96 = dma.hbm_to_vmem [thread:$0]  %s3637_s10, 64, %s91_s19, [#allocation8], %s3051_s8, %s3051_s8, %s3052_s28  }
  0x79   :  { %s3053_s17 = smov [#allocation12]   ;;  %s3054_s22 = smov [#allocation15]  }
  0x7a   :  { %s114_s21 = sshll.u32 %s3053_s17, 4  ;;  %s138_s5 = sshll.u32 %s3054_s22, 4  ;;  %s115_s21 = int_to_ptr.vmem [resolvable:$true] %s114_s21  ;;  %s139_s5 = int_to_ptr.vmem [resolvable:$true] %s138_s5 }
  0x7b   :  { %s2984_s24 = scalar_lea.hbm %s3639_s12, 32 }
  0x7c   :  { %p2985_p0 = scmp.ne.s32.totalorder %s3639_s12, %s2984_s24  ;;  %p2988_p1 = scmp.lt.u32.totalorder %s2984_s24, %s3639_s12 }
  0x7e   :  { %p2990_p2 = pnand %p2988_p1, %p2985_p0 }
  0x80   :  { %2993 = shalt.err (!%p2990_p2)
}
  0x81   :  { %s2994_s10 = scalar_lea.vmem %s115_s21, 32  ;;  %p2999_p4 = scmp.lt.s32.totalorder %s115_s21, %s115_s21 }
  0x82   :  { %p2995_p3 = scmp.ne.s32.totalorder %s115_s21, %s2994_s10  ;;  %p3000_p5 = scmp.lt.s32.totalorder %s2994_s10, %s2994_s10 }
  0x84   :  { %p3001_p6 = por %p3000_p5, %p2999_p4 }
  0x86   :  { %p3002_p7 = pnand %p3001_p6, %p2995_p3 }
  0x88   :  { %3005 = shalt.err (!%p3002_p7)
}
  0x89   :  { %120 = dma.hbm_to_vmem [thread:$0]  %s3639_s12, 32, %s115_s21, [#allocation11], %s3648_s20, %s3648_s20, %s3647_s11  }
  0x8a   :  { %s3006_s8 = scalar_lea.hbm %s3641_s14, 32 }
  0x8b   :  { %p3007_p8 = scmp.ne.s32.totalorder %s3641_s14, %s3006_s8  ;;  %p3010_p9 = scmp.lt.u32.totalorder %s3006_s8, %s3641_s14 }
  0x8d   :  { %p3012_p10 = pnand %p3010_p9, %p3007_p8 }
  0x8f   :  { %3015 = shalt.err (!%p3012_p10)
}
  0x90   :  { %s3016_s22 = scalar_lea.vmem %s139_s5, 32  ;;  %p3021_p12 = scmp.lt.s32.totalorder %s139_s5, %s139_s5 }
  0x91   :  { %p3017_p11 = scmp.ne.s32.totalorder %s139_s5, %s3016_s22  ;;  %p3022_p13 = scmp.lt.s32.totalorder %s3016_s22, %s3016_s22 }
  0x93   :  { %p3023_p0 = por %p3022_p13, %p3021_p12 }
  0x95   :  { %p3024_p1 = pnand %p3023_p0, %p3017_p11 }
  0x97   :  { %3027 = shalt.err (!%p3024_p1)
}
  0x98   :  { %144 = dma.hbm_to_vmem [thread:$0]  %s3641_s14, 32, %s139_s5, [#allocation14], %s3648_s20, %s3648_s20, %s3647_s11  }
  0x99   :  { %3028 = dma.done.wait [#allocation3], 2048  }
  0x9a   :  { %3029 = vsyncadd [#allocation3], 4294965248 }
  0x9b   :  { %3030 = dma.done.wait [#allocation5], 64  }
  0x9c   :  { %3031 = vsyncadd [#allocation5], 4294967232 }
  0x9d   :  { %3032 = dma.done.wait [#allocation8], 4160  }
  0x9e   :  { %3033 = vsyncadd [#allocation8], 4294963136 }
  0x9f   :  { %3034 = dma.done.wait [#allocation11], 4128  }
  0xa0   :  { %3035 = vsyncadd [#allocation11], 4294963168 }
  0xa1   :  { %3036 = dma.done.wait [#allocation14], 64  }
  0xa2   :  { %3037 = vsyncadd [#allocation14], 4294967232  ;;  %v3055_v0 = vmov 0   ;;  %v2604_v1 = vld [vmem:[%s3630_s3 + $0x4] ss:$12 sps:$4 sm:$0xff]   ;;  %v3338_v18 = vld [vmem:[%s3627_s0 + $0x8] sm:$0xff]  ;;  %v216_v20 = vlaneseq }
  0xa3   :  { %391 = vmatprep.mubr.bf16.mxu0 %v3055_v0  ;;  %v2606_v2 = vld [vmem:[%s3630_s3] ss:$12 sps:$4 sm:$0xff]   ;;  %359 = vmatprep.subr.bf16.mxu0 %v2604_v1  ;;  %v2607_v3 = vld [vmem:[%s3630_s3 + $0x1c] ss:$12 sps:$4 sm:$0xff]   ;;  %v2609_v4 = vld [vmem:[%s3630_s3 + $0x18] ss:$12 sps:$4 sm:$0xff]  }
  0xa4   :  { %360 = vmatpush1.bf16.msra.mxu0 %v2606_v2  ;;  %v2610_v5 = vld [vmem:[%s3630_s3 + $0x34] ss:$12 sps:$4 sm:$0xff]   ;;  %v2612_v6 = vld [vmem:[%s3630_s3 + $0x30] ss:$12 sps:$4 sm:$0xff]   ;;  %v2613_v7 = vld [vmem:[%s3630_s3 + $0x4c] ss:$12 sps:$4 sm:$0xff]  }
  0xa5   :  { %361 = vmatprep.subr.bf16.mxu0 %v2607_v3  ;;  %v2615_v8 = vld [vmem:[%s3630_s3 + $0x48] ss:$12 sps:$4 sm:$0xff]   ;;  %v2616_v9 = vld [vmem:[%s3630_s3 + $0x64] ss:$12 sps:$4 sm:$0xff]   ;;  %v2618_v10 = vld [vmem:[%s3630_s3 + $0x60] ss:$12 sps:$4 sm:$0xff]  }
  0xa6   :  { %v2619_v11 = vld [vmem:[%s3630_s3 + $0x7c] ss:$12 sps:$4 sm:$0xff]   ;;  %v2621_v12 = vld [vmem:[%s3630_s3 + $0x78] ss:$12 sps:$4 sm:$0xff]   ;;  %v2622_v13 = vld [vmem:[%s3630_s3 + $0x94] ss:$12 sps:$4 sm:$0xff]  }
  0xa7   :  { %v2624_v14 = vld [vmem:[%s3630_s3 + $0x90] ss:$12 sps:$4 sm:$0xff]   ;;  %v2625_v15 = vld [vmem:[%s3630_s3 + $0xac] ss:$12 sps:$4 sm:$0xff]   ;;  %v2627_v16 = vld [vmem:[%s3630_s3 + $0xa8] ss:$12 sps:$4 sm:$0xff]  }
  0xa8   :  { %362 = vmatpush1.bf16.msra.mxu0 %v2609_v4  ;;  %v3333_v17 = vld [vmem:[%s3627_s0] sm:$0xff]  ;;  %v3342_v21 = vshrl.u32 %v216_v20, 7  ;;  %v2628_v44 = vld [vmem:[%s3630_s3 + $0x8] ss:$12 sps:$4 sm:$0xff]   ;;  %v3056_v45 = vmov 0.0   ;;  %vm3057_vm0 = vmmov 0  }
  0xa9   :  { %363 = vmatprep.subr.bf16.mxu0 %v2610_v5  ;;  %v181_v19 = vpack.c.bf16 %v3338_v18, %v3333_v17  ;;  %v3350_v23 = vld [vmem:[%s3631_s4] sm:$0x7]  ;;  %2480 = vmatprep.subr.bf16.mxu1 %v3056_v45  ;;  %v2630_v47 = vld [vmem:[%s3630_s3 + $0x38] ss:$12 sps:$4 sm:$0xff]   ;;  %v2631_v48 = vld [vmem:[%s3630_s3 + $0x50] ss:$12 sps:$4 sm:$0xff]  }
  0xaa   :  { %v3345_v22 = vsub.s32 0, %v3342_v21  ;;  %v3353_v24 = vsub.s32 1, %v3342_v21  ;;  %v3362_v30 = vld [vmem:[%s3629_s2] ss:$0 sm:$0xff]  ;;  %v3367_v31 = vld [vmem:[%s3629_s2 + $0x1] ss:$0 sm:$0xff]  ;;  %2496 = vmatprep.mubr.msk.bf16.mxu1 %vm3057_vm0, %v3056_v45  ;;  %2481 = vmatpush3.bf16.msra.mxu1 %v2628_v44 }
  0xab   :  { %v2629_v46 = vld [vmem:[%s3630_s3 + $0x20] ss:$12 sps:$4 sm:$0xff]   ;;  %2482 = vmatprep.subr.bf16.mxu1 %v3056_v45  ;;  %v2632_v49 = vld [vmem:[%s3630_s3 + $0x68] ss:$12 sps:$4 sm:$0xff]   ;;  %v2634_v51 = vld [vmem:[%s3630_s3 + $0x98] ss:$12 sps:$4 sm:$0xff]  }
  0xac   :  { %364 = vmatpush1.bf16.msra.mxu0 %v2612_v6  ;;  %v219_v25 = vrot.slane %v3350_v23, %v3345_v22  ;;  %v223_v27 = vrot.slane %v3350_v23, %v3353_v24  ;;  %v2633_v50 = vld [vmem:[%s3630_s3 + $0x80] ss:$12 sps:$4 sm:$0xff]   ;;  %v2635_v52 = vld [vmem:[%s3630_s3 + $0xb0] ss:$12 sps:$4 sm:$0xff]   ;;  %vm515_vm1 = vcmask 130048  }
  0xad   :  { %365 = vmatprep.subr.bf16.mxu0 %v2613_v7  ;;  %v3411_v54 = vld [vmem:[%s3628_s1 + $0x10] sm:$0xff]  ;;  %v3416_v57 = vld [vmem:[%s3628_s1] sm:$0xff]  ;;  %v3421_v60 = vld [vmem:[%s3628_s1 + $0x18] sm:$0xff] }
  0xae   :  { %2483 = vmatpush3.bf16.msra.mxu1 %v2629_v46  ;;  %v3427_v1 = vld [vmem:[%s3628_s1 + $0x8] sm:$0xff] }
  0xaf   :  { %2484 = vmatprep.subr.bf16.mxu1 %v3056_v45 }
  0xb0   :  { %366 = vmatpush1.bf16.msra.mxu0 %v2615_v8 }
  0xb1   :  { %367 = vmatprep.subr.bf16.mxu0 %v2616_v9 }
  0xb2   :  { %2485 = vmatpush3.bf16.msra.mxu1 %v2630_v47 }
  0xb3   :  { %2486 = vmatprep.subr.bf16.mxu1 %v3056_v45 }
  0xb4   :  { %368 = vmatpush1.bf16.msra.mxu0 %v2618_v10 }
  0xb5   :  { %369 = vmatprep.subr.bf16.mxu0 %v2619_v11 }
  0xb6   :  { %2487 = vmatpush3.bf16.msra.mxu1 %v2631_v48 }
  0xb7   :  { %2488 = vmatprep.subr.bf16.mxu1 %v3056_v45 }
  0xb8   :  { %370 = vmatpush1.bf16.msra.mxu0 %v2621_v12 }
  0xb9   :  { %371 = vmatprep.subr.bf16.mxu0 %v2622_v13 }
  0xba   :  { %2489 = vmatpush3.bf16.msra.mxu1 %v2632_v49 }
  0xbb   :  { %2490 = vmatprep.subr.bf16.mxu1 %v3056_v45 }
  0xbc   :  { %372 = vmatpush1.bf16.msra.mxu0 %v2624_v14 }
  0xbd   :  { %373 = vmatprep.subr.bf16.mxu0 %v2625_v15 }
  0xbe   :  { %2491 = vmatpush3.bf16.msra.mxu1 %v2633_v50 }
  0xbf   :  { %2492 = vmatprep.subr.bf16.mxu1 %v3056_v45 }
  0xc0   :  { %374 = vmatpush1.bf16.msra.mxu0 %v2627_v16 }
  0xc2   :  { %2493 = vmatpush3.bf16.msra.mxu1 %v2634_v51 }
  0xc3   :  { %392 = vmatmul.mubr.bf16.vlgmr.msra.gmra.mrb[0].mxu0 %v181_v19  ;;  %2494 = vmatprep.subr.bf16.mxu1 %v3056_v45 }
  0xc6   :  { %2495 = vmatpush3.bf16.msra.mxu1 %v2635_v52 }
  0xc9   :  { %2497 = vmatmul.mubr.bf16.vlgmr.msra.gmra.mrb[0].mxu1 %v181_v19 }
  0xca   :  { %921 = vmatprep.mubr.bf16.mxu1 %v3055_v0 }
 0x196   :  { %v393_v26 = vpop.f32.mrb[0].mxu0 }
 0x197   :  { %v394_v28 = vadd.f32 %v393_v26, %v219_v25  ;;  %v395_v29 = vpop.f32.mrb[1].mxu0 }
 0x198   :  { %v397_v32 = vpop.f32.mrb[2].mxu0  ;;  %v396_v35 = vadd.f32 %v395_v29, %v223_v27 }
 0x199   :  { %v398_v33 = vadd.f32 %v397_v32, %v219_v25  ;;  %v399_v34 = vpop.f32.mrb[3].mxu0  ;;  %v447_v37 = vmul.f32 %v3362_v30, %v394_v28  ;;  %v453_v38 = vmul.f32 %v3367_v31, %v394_v28 }
 0x19a   :  { %v400_v36 = vadd.f32 %v399_v34, %v223_v27 }
 0x19b   :  { %v448_v39 = vmul.f32 %v3362_v30, %v398_v33  ;;  %v454_v40 = vmul.f32 %v3367_v31, %v398_v33 }
 0x19c   :  { %v457_v41 = vpack.c.bf16 %v400_v36, %v396_v35 }
 0x19d   :  { %v456_v42 = vpack.c.bf16 %v454_v40, %v453_v38  ;;  %v455_v43 = vpack.c.bf16 %v448_v39, %v447_v37  ;;  %v226_v38 = vsub.s32 2, %v3342_v21  ;;  %v436_v39 = vpop.f32.mrb[0].mxu1 }
 0x19e   :  { %2500 = vmatprep.subr.bf16.mxu0 %v457_v41 }
 0x19f   :  { %2501 = vmatpush3.bf16.xpose.msra.mxu0 %v457_v41  ;;  %2502 = vmatprep.mubr.bf16.mxu0 %v455_v43  ;;  %v227_v40 = vrot.slane %v3350_v23, %v226_v38  ;;  %v2498_v41 = vpop.f32.mrb[1].mxu1 }
 0x1a0   :  { %v2649_v41 = vld [vmem:[#allocation7 + $0x14] ss:$8 sps:$4 sm:$0xff]  }
 0x1a1   :  { %v437_v43 = vadd.f32 %v436_v39, %v227_v40  ;;  %v2644_v39 = vld [vmem:[#allocation7] ss:$8 sps:$4 sm:$0xff]  }
 0x1a6   :  { %2503 = vmatmul.mubr.bf16.vlgmr.msra.gmra.mrb[4].mxu0 %v456_v42  ;;  %v439_v42 = vpop.f32.mrb[2].mxu1 }
 0x1a7   :  { %v440_v44 = vadd.f32 %v439_v42, %v227_v40  ;;  %v2499_v46 = vpop.f32.mrb[3].mxu1  ;;  %v2646_v40 = vld [vmem:[#allocation7 + $0x4] ss:$8 sps:$4 sm:$0xff]   ;;  %v2647_v42 = vld [vmem:[#allocation7 + $0x10] ss:$8 sps:$4 sm:$0xff]  }
 0x1a8   :  { %889 = vmatprep.subr.bf16.mxu1 %v2646_v40  ;;  %v2680_v40 = vld [vmem:[#allocation10 + $0x70] sm:$0xff]  }
 0x1a9   :  { %v562_v47 = vpack.c.bf16 %v440_v44, %v437_v43  ;;  %890 = vmatpush1.bf16.msra.mxu1 %v2644_v39  ;;  %v2679_v39 = vld [vmem:[#allocation10 + $0x28] sm:$0xff]  }
 0x1aa   :  { %891 = vmatprep.subr.bf16.mxu1 %v2649_v41  ;;  %v2681_v41 = vld [vmem:[#allocation10 + $0x30] sm:$0xff]  }
 0x1ab   :  { %2506 = vmatprep.subr.bf16.mxu0 %v562_v47 }
 0x1ac   :  { %2507 = vmatpush3.bf16.msra.mxu0 %v562_v47 }
 0x1ad   :  { %2512 = vmatprep.subr.bf16.mxu0 %v3056_v45  ;;  %892 = vmatpush1.bf16.msra.mxu1 %v2647_v42  ;;  %v2682_v42 = vld [vmem:[#allocation10 + $0x78] sm:$0xff]  }
 0x279   :  { %v2504_v53 = vpop.f32.mrb[4].mxu0 }
 0x27a   :  { %v509_v55 = vmul.f32 0.125, %v2504_v53  ;;  %v492_v56 = vpop.f32.mrb[5].mxu0 }
 0x27b   :  { %v507_v58 = vmul.f32 0.125, %v492_v56  ;;  %v2505_v59 = vpop.f32.mrb[6].mxu0 }
 0x27c   :  { %v510_v61 = vmul.f32 0.125, %v2505_v59  ;;  %v495_v62 = vpop.f32.mrb[7].mxu0  ;;  %v513_v63 = vadd.f32 %v509_v55, %v3411_v54 }
 0x27d   :  { %v508_v2 = vmul.f32 0.125, %v495_v62  ;;  %v511_v3 = vadd.f32 %v507_v58, %v3416_v57 }
 0x27e   :  { %v522_v4 = vsel %vm515_vm1, %v513_v63, -inf  ;;  %v514_v5 = vadd.f32 %v510_v61, %v3421_v60 }
 0x27f   :  { %523 = vmax.xlane.f32.xlu1 %v522_v4  ;;  %v516_v6 = vsel %vm515_vm1, %v511_v3, -inf  ;;  %v512_v7 = vadd.f32 %v508_v2, %v3427_v1  ;;  %v2638_v4 = vld [vmem:[#allocation2 + $0x10] sm:$0xff]  }
 0x280   :  { %517 = vmax.xlane.f32.xlu0 %v516_v6  ;;  %v525_v8 = vsel %vm515_vm1, %v514_v5, -inf  ;;  %v2640_v6 = vld [vmem:[#allocation2 + $0x20] sm:$0xff]  }
 0x281   :  { %v519_v9 = vsel %vm515_vm1, %v512_v7, -inf }
 0x283   :  { %526 = vmax.xlane.f32.xlu1 %v525_v8  ;;  %v2642_v8 = vld [vmem:[#allocation2 + $0x30] sm:$0xff]  }
 0x284   :  { %520 = vmax.xlane.f32.xlu0 %v519_v9  ;;  %v2643_v9 = vld [vmem:[#allocation2 + $0x38] sm:$0xff]  }
 0x30c   :  { %v524_v10 = vpop.xlane.xlu1 %523 }
 0x30d   :  { %v530_v11 = vsub.f32 %v513_v63, %v524_v10  ;;  %v518_v12 = vpop.xlane.xlu0 %517  ;;  %v2636_v63 = vld [vmem:[#allocation2] sm:$0xff]  }
 0x30e   :  { %v528_v13 = vsub.f32 %v511_v3, %v518_v12  ;;  %v2637_v3 = vld [vmem:[#allocation2 + $0x8] sm:$0xff]  }
 0x30f   :  { %v536_v14 = vmul.f32 1.442695, %v530_v11 }
 0x310   :  { %v532_v15 = vmul.f32 1.442695, %v528_v13  ;;  %v527_v16 = vpop.xlane.xlu1 %526 }
 0x311   :  { %v531_v19 = vsub.f32 %v514_v5, %v527_v16  ;;  %v521_v20 = vpop.xlane.xlu0 %520  ;;  %v2639_v5 = vld [vmem:[#allocation2 + $0x18] sm:$0xff]  }
 0x312   :  { %2764 = vpow2.f32 %v532_v15  ;;  %v529_v25 = vsub.f32 %v512_v7, %v521_v20  ;;  %v2641_v7 = vld [vmem:[#allocation2 + $0x28] sm:$0xff]  }
 0x313   :  { %2766 = vpow2.f32 %v536_v14  ;;  %v538_v26 = vmul.f32 1.442695, %v531_v19 }
 0x314   :  { %v534_v27 = vmul.f32 1.442695, %v529_v25 }
 0x316   :  { %2768 = vpow2.f32 %v534_v27  ;;  %v2236_v27 = vld [vmem:[%s3633_s6] ss:$0 sm:$0xff] }
 0x317   :  { %2770 = vpow2.f32 %v538_v26 }
 0x31c   :  { %v2765_v28 = vpop.eup %2764 }
 0x31d   :  { %v540_v29 = vsel %vm515_vm1, %v2765_v28, 0.0  ;;  %v2767_v32 = vpop.eup %2766 }
 0x31e   :  { %541 = vadd.xlane.f32.xlu0 %v540_v29  ;;  %v546_v34 = vsel %vm515_vm1, %v2767_v32, 0.0 }
 0x320   :  { %v2769_v33 = vpop.eup %2768 }
 0x321   :  { %v543_v35 = vsel %vm515_vm1, %v2769_v33, 0.0  ;;  %v2771_v36 = vpop.eup %2770 }
 0x322   :  { %547 = vadd.xlane.f32.xlu0 %v546_v34  ;;  %544 = vadd.xlane.f32.xlu1 %v543_v35  ;;  %v549_v37 = vsel %vm515_vm1, %v2771_v36, 0.0 }
 0x326   :  { %550 = vadd.xlane.f32.xlu1 %v549_v37 }
 0x3ab   :  { %v542_v48 = vpop.xlane.xlu0 %541 }
 0x3ac   :  { %2772 = vrcp.f32 %v542_v48 }
 0x3af   :  { %v545_v49 = vpop.xlane.xlu1 %544  ;;  %v548_v50 = vpop.xlane.xlu0 %547 }
 0x3b0   :  { %2774 = vrcp.f32 %v545_v49 }
 0x3b1   :  { %2776 = vrcp.f32 %v548_v50 }
 0x3b3   :  { %v551_v51 = vpop.xlane.xlu1 %550 }
 0x3b4   :  { %2778 = vrcp.f32 %v551_v51  ;;  %v2650_v51 = vld [vmem:[#allocation7 + $0x20] ss:$8 sps:$4 sm:$0xff]  }
 0x3b6   :  { %v2773_v52 = vpop.eup %2772 }
 0x3b7   :  { %v553_v53 = vmul.f32 %v2773_v52, %v2765_v28  ;;  %v2655_v52 = vld [vmem:[#allocation7 + $0x34] ss:$8 sps:$4 sm:$0xff]  }
 0x3ba   :  { %v2775_v23 = vpop.eup %2774 }
 0x3bb   :  { %v555_v55 = vmul.f32 %v2775_v23, %v2769_v33  ;;  %v2777_v56 = vpop.eup %2776  ;;  %v2653_v23 = vld [vmem:[#allocation7 + $0x30] ss:$8 sps:$4 sm:$0xff]  }
 0x3bc   :  { %v557_v61 = vmul.f32 %v2777_v56, %v2767_v32  ;;  %v2661_v56 = vld [vmem:[#allocation7 + $0x54] ss:$8 sps:$4 sm:$0xff]  }
 0x3bd   :  { %v560_v58 = vpack.c.bf16 %v555_v55, %v553_v53  ;;  %v2658_v53 = vld [vmem:[#allocation7 + $0x44] ss:$8 sps:$4 sm:$0xff]   ;;  %v2656_v55 = vld [vmem:[#allocation7 + $0x40] ss:$8 sps:$4 sm:$0xff]  }
 0x3be   :  { %v2779_v59 = vpop.eup %2778 }
 0x3bf   :  { %v559_v62 = vmul.f32 %v2779_v59, %v2771_v36  ;;  %2508 = vmatprep.mubr.msk.bf16.mxu0 %vm515_vm1, %v560_v58  ;;  %v2659_v58 = vld [vmem:[#allocation7 + $0x50] ss:$8 sps:$4 sm:$0xff]   ;;  %v2664_v59 = vld [vmem:[#allocation7 + $0x64] ss:$8 sps:$4 sm:$0xff]  }
 0x3c1   :  { %v561_v2 = vpack.c.bf16 %v559_v62, %v557_v61  ;;  %v2662_v61 = vld [vmem:[#allocation7 + $0x60] ss:$8 sps:$4 sm:$0xff]   ;;  %v2667_v62 = vld [vmem:[#allocation7 + $0x74] ss:$8 sps:$4 sm:$0xff]  }
 0x3c3   :  { %2509 = vmatmul.mubr.msk.bf16.vlgmr.msra.gmra.mrb[8].mxu0 %vm515_vm1, %v561_v2 }
 0x3c4   :  { %2513 = vmatpush3.bf16.msra.mxu0 %v2636_v63  ;;  %2528 = vmatprep.mubr.msk.bf16.mxu0 %vm3057_vm0, %v3056_v45  ;;  %v2665_v63 = vld [vmem:[#allocation7 + $0x70] ss:$8 sps:$4 sm:$0xff]  }
 0x3c5   :  { %2514 = vmatprep.subr.bf16.mxu0 %v3056_v45 }
 0x3c8   :  { %2515 = vmatpush3.bf16.msra.mxu0 %v2637_v3 }
 0x3c9   :  { %2516 = vmatprep.subr.bf16.mxu0 %v3056_v45 }
 0x3cc   :  { %2517 = vmatpush3.bf16.msra.mxu0 %v2638_v4 }
 0x3cd   :  { %2518 = vmatprep.subr.bf16.mxu0 %v3056_v45 }
 0x3d0   :  { %2519 = vmatpush3.bf16.msra.mxu0 %v2639_v5 }
 0x3d1   :  { %2520 = vmatprep.subr.bf16.mxu0 %v3056_v45 }
 0x3d4   :  { %2521 = vmatpush3.bf16.msra.mxu0 %v2640_v6 }
 0x3d5   :  { %2522 = vmatprep.subr.bf16.mxu0 %v3056_v45 }
 0x3d8   :  { %2523 = vmatpush3.bf16.msra.mxu0 %v2641_v7 }
 0x3d9   :  { %2524 = vmatprep.subr.bf16.mxu0 %v3056_v45 }
 0x3dc   :  { %2525 = vmatpush3.bf16.msra.mxu0 %v2642_v8 }
 0x3dd   :  { %2526 = vmatprep.subr.bf16.mxu0 %v3056_v45 }
 0x3e0   :  { %2527 = vmatpush3.bf16.msra.mxu0 %v2643_v9  ;;  %v2245_v9 = vld [vmem:[#allocation4] ss:$0 sm:$0xff] }
 0x496   :  { %v2510_v10 = vpop.f32.mrb[8].mxu0 }
 0x497   :  { %v620_v11 = vmul.f32 %v2510_v10, %v3367_v31  ;;  %v603_v12 = vpop.f32.mrb[9].mxu0 }
 0x498   :  { %v618_v13 = vmul.f32 %v3362_v30, %v603_v12  ;;  %v2511_v14 = vpop.f32.mrb[10].mxu0 }
 0x499   :  { %v621_v15 = vmul.f32 %v2511_v14, %v3367_v31  ;;  %v606_v16 = vpop.f32.mrb[11].mxu0  ;;  %v2246_v14 = vld [vmem:[#allocation6] ss:$0 sm:$0xff] }
 0x49a   :  { %v622_v19 = vadd.f32 %v620_v11, %v618_v13  ;;  %v619_v20 = vmul.f32 %v3362_v30, %v606_v16 }
 0x49c   :  { %v623_v25 = vadd.f32 %v621_v15, %v619_v20 }
 0x49e   :  { %v624_v26 = vpack.c.bf16 %v623_v25, %v622_v19  ;;  %v2668_v25 = vld [vmem:[#allocation10 + $0x40] sm:$0xff]  }
 0x49f   :  { %2412 = vmatprep.subr.bf16.mxu0 %v2668_v25 }
 0x4a0   :  { %2529 = vmatmul.mubr.bf16.vlgmr.msra.gmra.mrb[12].mxu0 %v624_v26  ;;  %v2669_v26 = vld [vmem:[#allocation10] sm:$0xff]  }
 0x4a1   :  { %2413 = vmatpush3.bf16.msra.mxu0 %v2669_v26 }
 0x573   :  { %v730_v28 = vpop.f32.mrb[12].mxu0 }
 0x574   :  { %v731_v29 = vadd.f32 %v2236_v27, %v730_v28  ;;  %v2530_v32 = vpop.f32.mrb[13].mxu0  ;;  %v2671_v28 = vld [vmem:[#allocation10 + $0x8] sm:$0xff]  }
 0x575   :  { %v733_v33 = vpop.f32.mrb[14].mxu0  ;;  %v2673_v32 = vld [vmem:[#allocation10 + $0x10] sm:$0xff]  }
 0x576   :  { %v734_v34 = vadd.f32 %v2236_v27, %v733_v33  ;;  %v2531_v35 = vpop.f32.mrb[15].mxu0  ;;  %v737_v36 = vadd.f32 %v731_v29, %v3333_v17  ;;  %v2670_v27 = vld [vmem:[#allocation10 + $0x48] sm:$0xff]   ;;  %v2672_v29 = vld [vmem:[#allocation10 + $0x50] sm:$0xff]   ;;  %v2674_v33 = vld [vmem:[#allocation10 + $0x58] sm:$0xff]  }
 0x577   :  { %2414 = vmatprep.subr.bf16.mxu0 %v2670_v27  ;;  %v2676_v35 = vld [vmem:[#allocation10 + $0x60] sm:$0xff]  }
 0x578   :  { %741 = vadd.xlane.f32.xlu0 %v737_v36  ;;  %v738_v37 = vadd.f32 %v734_v34, %v3338_v18  ;;  %v2652_v18 = vld [vmem:[#allocation7 + $0x24] ss:$8 sps:$4 sm:$0xff]   ;;  %2415 = vmatpush3.bf16.msra.mxu0 %v2671_v28  ;;  %v2675_v34 = vld [vmem:[#allocation10 + $0x18] sm:$0xff]  }
 0x579   :  { %893 = vmatprep.subr.bf16.mxu1 %v2652_v18  ;;  %2416 = vmatprep.subr.bf16.mxu0 %v2672_v29 }
 0x57a   :  { %743 = vadd.xlane.f32.xlu1 %v738_v37  ;;  %894 = vmatpush1.bf16.msra.mxu1 %v2650_v51 }
 0x57b   :  { %895 = vmatprep.subr.bf16.mxu1 %v2655_v52 }
 0x57c   :  { %2417 = vmatpush3.bf16.msra.mxu0 %v2673_v32 }
 0x57d   :  { %2418 = vmatprep.subr.bf16.mxu0 %v2674_v33 }
 0x57e   :  { %896 = vmatpush1.bf16.msra.mxu1 %v2653_v23 }
 0x57f   :  { %897 = vmatprep.subr.bf16.mxu1 %v2658_v53 }
 0x580   :  { %2419 = vmatpush3.bf16.msra.mxu0 %v2675_v34 }
 0x581   :  { %2420 = vmatprep.subr.bf16.mxu0 %v2676_v35 }
 0x582   :  { %898 = vmatpush1.bf16.msra.mxu1 %v2656_v55 }
 0x583   :  { %899 = vmatprep.subr.bf16.mxu1 %v2661_v56 }
 0x586   :  { %900 = vmatpush1.bf16.msra.mxu1 %v2659_v58 }
 0x587   :  { %901 = vmatprep.subr.bf16.mxu1 %v2664_v59 }
 0x58a   :  { %902 = vmatpush1.bf16.msra.mxu1 %v2662_v61 }
 0x58b   :  { %903 = vmatprep.subr.bf16.mxu1 %v2667_v62 }
 0x58e   :  { %904 = vmatpush1.bf16.msra.mxu1 %v2665_v63 }
 0x605   :  { %v742_v43 = vpop.xlane.xlu0 %741 }
 0x606   :  { %v746_v44 = vmul.f32 0.0078125, %v742_v43  ;;  %v2683_v43 = vld [vmem:[#allocation10 + $0x38] sm:$0xff]  }
 0x607   :  { %v744_v46 = vpop.xlane.xlu1 %743 }
 0x608   :  { %v748_v47 = vsub.f32 %v737_v36, %v746_v44  ;;  %v747_v48 = vmul.f32 0.0078125, %v744_v46  ;;  %v2677_v36 = vld [vmem:[#allocation10 + $0x20] sm:$0xff]   ;;  %v797_v44 = vld [vmem:[#allocation9] sm:$0x3] }
 0x609   :  { %2421 = vmatpush3.bf16.msra.mxu0 %v2677_v36  ;;  %v802_v46 = vrot.slane %v797_v44, %v3345_v22 }
 0x60a   :  { %v749_v49 = vsub.f32 %v738_v37, %v747_v48  ;;  %v750_v50 = vmul.f32 %v748_v47, %v748_v47  ;;  %v2678_v37 = vld [vmem:[#allocation10 + $0x68] sm:$0xff]  }
 0x60b   :  { %2422 = vmatprep.subr.bf16.mxu0 %v2678_v37 }
 0x60c   :  { %752 = vadd.xlane.f32.xlu0 %v750_v50  ;;  %v751_v17 = vmul.f32 %v749_v49, %v749_v49 }
 0x60d   :  { %2423 = vmatpush3.bf16.msra.mxu0 %v2679_v39 }
 0x60e   :  { %754 = vadd.xlane.f32.xlu1 %v751_v17  ;;  %2424 = vmatprep.subr.bf16.mxu0 %v2680_v40 }
 0x611   :  { %2425 = vmatpush3.bf16.msra.mxu0 %v2681_v41 }
 0x612   :  { %2426 = vmatprep.subr.bf16.mxu0 %v2682_v42 }
 0x615   :  { %2427 = vmatpush3.bf16.msra.mxu0 %v2683_v43 }
 0x616   :  { %2532 = vmatprep.subr.bf16.mxu0 %v3056_v45 }
 0x699   :  { %v753_v2 = vpop.xlane.xlu0 %752 }
 0x69a   :  { %v756_v3 = vmul.f32 0.0078125, %v753_v2 }
 0x69b   :  { %v755_v4 = vpop.xlane.xlu1 %754 }
 0x69c   :  { %v758_v5 = vadd.f32 1e-12, %v756_v3  ;;  %v757_v6 = vmul.f32 0.0078125, %v755_v4 }
 0x69e   :  { %2780 = vrsqrt.f32 %v758_v5  ;;  %v759_v7 = vadd.f32 1e-12, %v757_v6 }
 0x6a0   :  { %2782 = vrsqrt.f32 %v759_v7 }
 0x6a8   :  { %v2781_v8 = vpop.eup %2780 }
 0x6a9   :  { %v762_v10 = vmul.f32 %v2781_v8, %v748_v47  ;;  %v806_v47 = vrot.slane %v797_v44, %v3353_v24  ;;  %v2263_v44 = vld [vmem:[#allocation12] ss:$0 sm:$0xff] }
 0x6aa   :  { %v2783_v11 = vpop.eup %2782 }
 0x6ab   :  { %v763_v12 = vmul.f32 %v2783_v11, %v749_v49  ;;  %v770_v13 = vmul.f32 %v2245_v9, %v762_v10 }
 0x6ad   :  { %v771_v15 = vmul.f32 %v2245_v9, %v763_v12  ;;  %v3465_v16 = vadd.f32 %v2246_v14, %v770_v13 }
 0x6af   :  { %v3467_v19 = vadd.f32 %v2246_v14, %v771_v15 }
 0x6b1   :  { %v780_v20 = vpack.c.bf16 %v3467_v19, %v3465_v16 }
 0x6b3   :  { %922 = vmatmul.mubr.bf16.vlgmr.msra.gmra.mrb[4].mxu1 %v780_v20 }
 0x6b4   :  { %1400 = vmatprep.mubr.bf16.mxu1 %v3055_v0 }
 0x786   :  { %v923_v48 = vpop.f32.mrb[4].mxu1 }
 0x787   :  { %v924_v49 = vadd.f32 %v923_v48, %v802_v46  ;;  %v925_v50 = vpop.f32.mrb[5].mxu1 }
 0x788   :  { %v926_v17 = vadd.f32 %v925_v50, %v806_v47  ;;  %v927_v18 = vpop.f32.mrb[6].mxu1 }
 0x789   :  { %v936_v51 = vmul.f32 0.044715, %v924_v49  ;;  %v928_v52 = vadd.f32 %v927_v18, %v802_v46  ;;  %v929_v23 = vpop.f32.mrb[7].mxu1  ;;  %v932_v28 = vmul.f32 0.5, %v924_v49 }
 0x78a   :  { %v937_v53 = vmul.f32 0.044715, %v926_v17  ;;  %v930_v55 = vadd.f32 %v929_v23, %v806_v47  ;;  %v933_v33 = vmul.f32 0.5, %v926_v17  ;;  %v2684_v23 = vld [vmem:[%s3630_s3 + $0xc0] ss:$12 sps:$4 sm:$0xff]  }
 0x78b   :  { %v940_v56 = vmul.f32 %v936_v51, %v924_v49  ;;  %v938_v58 = vmul.f32 0.044715, %v928_v52  ;;  %v934_v29 = vmul.f32 0.5, %v928_v52 }
 0x78c   :  { %v941_v59 = vmul.f32 %v937_v53, %v926_v17  ;;  %v939_v61 = vmul.f32 0.044715, %v930_v55  ;;  %v935_v34 = vmul.f32 0.5, %v930_v55  ;;  %v2686_v53 = vld [vmem:[%s3630_s3 + $0xc4] ss:$12 sps:$4 sm:$0xff]  }
 0x78d   :  { %v944_v62 = vmul.f32 %v940_v56, %v924_v49  ;;  %v942_v63 = vmul.f32 %v938_v58, %v928_v52  ;;  %1368 = vmatprep.subr.bf16.mxu1 %v2686_v53  ;;  %v2688_v56 = vld [vmem:[%s3630_s3 + $0xd8] ss:$12 sps:$4 sm:$0xff]  }
 0x78e   :  { %v945_v2 = vmul.f32 %v941_v59, %v926_v17  ;;  %v943_v3 = vmul.f32 %v939_v61, %v930_v55  ;;  %1369 = vmatpush1.bf16.msra.mxu1 %v2684_v23 }
 0x78f   :  { %v948_v4 = vadd.f32 %v944_v62, %v924_v49  ;;  %v946_v5 = vmul.f32 %v942_v63, %v928_v52 }
 0x790   :  { %v947_v6 = vmul.f32 %v943_v3, %v930_v55  ;;  %v949_v7 = vadd.f32 %v945_v2, %v926_v17 }
 0x791   :  { %v952_v8 = vmul.f32 0.7978846, %v948_v4  ;;  %v950_v9 = vadd.f32 %v946_v5, %v928_v52  ;;  %v2694_v5 = vld [vmem:[%s3630_s3 + $0xf4] ss:$12 sps:$4 sm:$0xff]  }
 0x792   :  { %v951_v10 = vadd.f32 %v947_v6, %v930_v55  ;;  %v953_v11 = vmul.f32 0.7978846, %v949_v7  ;;  %v2687_v55 = vld [vmem:[%s3630_s3 + $0xc8] ss:$12 sps:$4 sm:$0xff]   ;;  %v2692_v6 = vld [vmem:[%s3630_s3 + $0xf0] ss:$12 sps:$4 sm:$0xff]  }
 0x793   :  { %2784 = vtanh.f32 %v952_v8  ;;  %v954_v12 = vmul.f32 0.7978846, %v950_v9  ;;  %v2695_v7 = vld [vmem:[%s3630_s3 + $0xf8] ss:$12 sps:$4 sm:$0xff]   ;;  %v2696_v9 = vld [vmem:[%s3630_s3 + $0x108] ss:$12 sps:$4 sm:$0xff]  }
 0x794   :  { %v955_v13 = vmul.f32 0.7978846, %v951_v10  ;;  %2786 = vtanh.f32 %v953_v11  ;;  %v2698_v8 = vld [vmem:[%s3630_s3 + $0x10c] ss:$12 sps:$4 sm:$0xff]   ;;  %v2699_v10 = vld [vmem:[%s3630_s3 + $0x110] ss:$12 sps:$4 sm:$0xff]  }
 0x795   :  { %2788 = vtanh.f32 %v954_v12  ;;  %v2702_v11 = vld [vmem:[%s3630_s3 + $0x124] ss:$12 sps:$4 sm:$0xff]   ;;  %v2700_v12 = vld [vmem:[%s3630_s3 + $0x120] ss:$12 sps:$4 sm:$0xff]  }
 0x796   :  { %2790 = vtanh.f32 %v955_v13  ;;  %v2703_v13 = vld [vmem:[%s3630_s3 + $0x128] ss:$12 sps:$4 sm:$0xff]  }
 0x79d   :  { %v2785_v14 = vpop.eup %2784 }
 0x79e   :  { %v2787_v15 = vpop.eup %2786  ;;  %v960_v20 = vadd.f32 1.0, %v2785_v14  ;;  %v2706_v14 = vld [vmem:[%s3630_s3 + $0x13c] ss:$12 sps:$4 sm:$0xff]  }
 0x79f   :  { %v2789_v25 = vpop.eup %2788  ;;  %v961_v26 = vadd.f32 1.0, %v2787_v15  ;;  %v2704_v15 = vld [vmem:[%s3630_s3 + $0x138] ss:$12 sps:$4 sm:$0xff]  }
 0x7a0   :  { %v2791_v27 = vpop.eup %2790  ;;  %v962_v32 = vadd.f32 1.0, %v2789_v25  ;;  %v964_v36 = vmul.f32 %v960_v20, %v932_v28  ;;  %v2707_v20 = vld [vmem:[%s3630_s3 + $0x140] ss:$12 sps:$4 sm:$0xff]  }
 0x7a1   :  { %v963_v35 = vadd.f32 1.0, %v2791_v27  ;;  %v965_v39 = vmul.f32 %v961_v26, %v933_v33  ;;  %v2710_v25 = vld [vmem:[%s3630_s3 + $0x154] ss:$12 sps:$4 sm:$0xff]   ;;  %v2708_v26 = vld [vmem:[%s3630_s3 + $0x150] ss:$12 sps:$4 sm:$0xff]  }
 0x7a2   :  { %v966_v37 = vmul.f32 %v962_v32, %v934_v29  ;;  %v2711_v27 = vld [vmem:[%s3630_s3 + $0x158] ss:$12 sps:$4 sm:$0xff]   ;;  %v2712_v29 = vld [vmem:[%s3630_s3 + $0x168] ss:$12 sps:$4 sm:$0xff]   ;;  %v2715_v32 = vld [vmem:[%s3630_s3 + $0x170] ss:$12 sps:$4 sm:$0xff]  }
 0x7a3   :  { %v967_v40 = vmul.f32 %v963_v35, %v935_v34  ;;  %v2714_v28 = vld [vmem:[%s3630_s3 + $0x16c] ss:$12 sps:$4 sm:$0xff]  }
 0x7a4   :  { %v968_v41 = vpack.c.bf16 %v966_v37, %v964_v36 }
 0x7a5   :  { %v969_v42 = vpack.c.bf16 %v967_v40, %v965_v39 }
 0x7a7   :  { %1137 = vmatprep.mubr.bf16.mxu0 %v969_v42 }
 0x7a8   :  { %1138 = vmatmul.mubr.bf16.vlgmr.msra.gmra.mrb[16].mxu0 %v968_v41  ;;  %v2280_v41 = vld [vmem:[#allocation13] ss:$0 sm:$0xff] }
 0x7a9   :  { %2548 = vmatprep.mubr.msk.bf16.mxu0 %vm3057_vm0, %v3056_v45  ;;  %2533 = vmatpush3.bf16.msra.mxu0 %v2687_v55 }
 0x7aa   :  { %2534 = vmatprep.subr.bf16.mxu0 %v3056_v45 }
 0x87b   :  { %v2428_v43 = vpop.f32.mrb[16].mxu0 }
 0x87c   :  { %v2429_v46 = vpop.f32.mrb[17].mxu0 }
 0x87d   :  { %v2430_v47 = vadd.f32 %v2429_v46, %v2428_v43  ;;  %v2431_v48 = vpop.f32.mrb[18].mxu0 }
 0x87e   :  { %v2432_v49 = vpop.f32.mrb[19].mxu0 }
 0x87f   :  { %v1140_v50 = vadd.f32 %v2430_v47, %v2263_v44  ;;  %v2433_v17 = vadd.f32 %v2432_v49, %v2431_v48  ;;  %v2281_v47 = vld [vmem:[#allocation15] ss:$0 sm:$0xff] }
 0x881   :  { %v1143_v18 = vadd.f32 %v2433_v17, %v2263_v44  ;;  %v1146_v51 = vadd.f32 %v1140_v50, %v3465_v16  ;;  %v2690_v16 = vld [vmem:[%s3630_s3 + $0xdc] ss:$12 sps:$4 sm:$0xff]  }
 0x882   :  { %1370 = vmatprep.subr.bf16.mxu1 %v2690_v16 }
 0x883   :  { %1150 = vadd.xlane.f32.xlu0 %v1146_v51  ;;  %v1147_v52 = vadd.f32 %v1143_v18, %v3467_v19  ;;  %v2691_v19 = vld [vmem:[%s3630_s3 + $0xe0] ss:$12 sps:$4 sm:$0xff]   ;;  %1371 = vmatpush1.bf16.msra.mxu1 %v2688_v56 }
 0x884   :  { %2535 = vmatpush3.bf16.msra.mxu0 %v2691_v19  ;;  %1372 = vmatprep.subr.bf16.mxu1 %v2694_v5  ;;  %v2314_v18 = vld [vmem:[%s3631_s4 + $0x3] sm:$0x7] }
 0x885   :  { %1152 = vadd.xlane.f32.xlu1 %v1147_v52  ;;  %2536 = vmatprep.subr.bf16.mxu0 %v3056_v45  ;;  %v1232_v55 = vrot.slane %v2314_v18, %v3353_v24 }
 0x887   :  { %1373 = vmatpush1.bf16.msra.mxu1 %v2692_v6 }
 0x888   :  { %2537 = vmatpush3.bf16.msra.mxu0 %v2695_v7  ;;  %1374 = vmatprep.subr.bf16.mxu1 %v2698_v8 }
 0x889   :  { %2538 = vmatprep.subr.bf16.mxu0 %v3056_v45 }
 0x88b   :  { %1375 = vmatpush1.bf16.msra.mxu1 %v2696_v9 }
 0x88c   :  { %2539 = vmatpush3.bf16.msra.mxu0 %v2699_v10  ;;  %1376 = vmatprep.subr.bf16.mxu1 %v2702_v11 }
 0x88d   :  { %2540 = vmatprep.subr.bf16.mxu0 %v3056_v45 }
 0x88f   :  { %1377 = vmatpush1.bf16.msra.mxu1 %v2700_v12 }
 0x890   :  { %2541 = vmatpush3.bf16.msra.mxu0 %v2703_v13  ;;  %1378 = vmatprep.subr.bf16.mxu1 %v2706_v14 }
 0x891   :  { %2542 = vmatprep.subr.bf16.mxu0 %v3056_v45 }
 0x893   :  { %1379 = vmatpush1.bf16.msra.mxu1 %v2704_v15 }
 0x894   :  { %2543 = vmatpush3.bf16.msra.mxu0 %v2707_v20  ;;  %1380 = vmatprep.subr.bf16.mxu1 %v2710_v25 }
 0x895   :  { %2544 = vmatprep.subr.bf16.mxu0 %v3056_v45 }
 0x897   :  { %1381 = vmatpush1.bf16.msra.mxu1 %v2708_v26 }
 0x898   :  { %2545 = vmatpush3.bf16.msra.mxu0 %v2711_v27  ;;  %1382 = vmatprep.subr.bf16.mxu1 %v2714_v28 }
 0x899   :  { %2546 = vmatprep.subr.bf16.mxu0 %v3056_v45 }
 0x89b   :  { %1383 = vmatpush1.bf16.msra.mxu1 %v2712_v29 }
 0x89c   :  { %2547 = vmatpush3.bf16.msra.mxu0 %v2715_v32 }
 0x910   :  { %v1151_v58 = vpop.xlane.xlu0 %1150 }
 0x911   :  { %v1154_v59 = vmul.f32 0.0078125, %v1151_v58 }
 0x912   :  { %v1153_v61 = vpop.xlane.xlu1 %1152 }
 0x913   :  { %v1156_v62 = vsub.f32 %v1146_v51, %v1154_v59  ;;  %v1155_v63 = vmul.f32 0.0078125, %v1153_v61  ;;  %v1228_v51 = vrot.slane %v2314_v18, %v3345_v22 }
 0x915   :  { %v1157_v2 = vsub.f32 %v1147_v52, %v1155_v63  ;;  %v1158_v3 = vmul.f32 %v1156_v62, %v1156_v62  ;;  %v1236_v52 = vrot.slane %v2314_v18, %v226_v38 }
 0x917   :  { %1160 = vadd.xlane.f32.xlu0 %v1158_v3  ;;  %v1159_v4 = vmul.f32 %v1157_v2, %v1157_v2 }
 0x919   :  { %1162 = vadd.xlane.f32.xlu1 %v1159_v4 }
 0x9a4   :  { %v1161_v33 = vpop.xlane.xlu0 %1160 }
 0x9a5   :  { %v1164_v34 = vmul.f32 0.0078125, %v1161_v33 }
 0x9a6   :  { %v1163_v35 = vpop.xlane.xlu1 %1162 }
 0x9a7   :  { %v1166_v36 = vadd.f32 1e-12, %v1164_v34  ;;  %v1165_v37 = vmul.f32 0.0078125, %v1163_v35 }
 0x9a9   :  { %2792 = vrsqrt.f32 %v1166_v36  ;;  %v1167_v39 = vadd.f32 1e-12, %v1165_v37 }
 0x9ab   :  { %2794 = vrsqrt.f32 %v1167_v39 }
 0x9b3   :  { %v2793_v40 = vpop.eup %2792 }
 0x9b4   :  { %v1170_v42 = vmul.f32 %v2793_v40, %v1156_v62 }
 0x9b5   :  { %v2795_v43 = vpop.eup %2794 }
 0x9b6   :  { %v1171_v44 = vmul.f32 %v2795_v43, %v1157_v2  ;;  %v1178_v46 = vmul.f32 %v2280_v41, %v1170_v42 }
 0x9b8   :  { %v1179_v48 = vmul.f32 %v2280_v41, %v1171_v44  ;;  %v3558_v49 = vadd.f32 %v2281_v47, %v1178_v46 }
 0x9ba   :  { %v3560_v50 = vadd.f32 %v2281_v47, %v1179_v48 }
 0x9bc   :  { %v1188_v17 = vpack.c.bf16 %v3560_v50, %v3558_v49 }
 0x9be   :  { %1401 = vmatmul.mubr.bf16.vlgmr.msra.gmra.mrb[8].mxu1 %v1188_v17  ;;  %2549 = vmatmul.mubr.bf16.vlgmr.msra.gmra.mrb[20].mxu0 %v1188_v17 }
 0x9bf   :  { %1926 = vmatprep.mubr.bf16.mxu0 %v3055_v0 }
 0xa91   :  { %v1402_v23 = vpop.f32.mrb[8].mxu1  ;;  %v1445_v53 = vpop.f32.mrb[20].mxu0 }
 0xa92   :  { %v1403_v16 = vadd.f32 %v1402_v23, %v1228_v51  ;;  %v1404_v19 = vpop.f32.mrb[9].mxu1  ;;  %v2550_v56 = vpop.f32.mrb[21].mxu0  ;;  %v1446_v61 = vadd.f32 %v1445_v53, %v1236_v52 }
 0xa93   :  { %v1406_v58 = vpop.f32.mrb[10].mxu1  ;;  %v1448_v59 = vpop.f32.mrb[22].mxu0  ;;  %v1405_v4 = vadd.f32 %v1404_v19, %v1232_v55 }
 0xa94   :  { %v1407_v0 = vadd.f32 %v1406_v58, %v1228_v51  ;;  %v1449_v62 = vadd.f32 %v1448_v59, %v1236_v52  ;;  %v1408_v63 = vpop.f32.mrb[11].mxu1  ;;  %v2551_v2 = vpop.f32.mrb[23].mxu0  ;;  %v1452_v3 = vmul.f32 %v3362_v30, %v1403_v16  ;;  %v1454_v21 = vmul.f32 %v3367_v31, %v1403_v16 }
 0xa95   :  { %v1409_v5 = vadd.f32 %v1408_v63, %v1232_v55 }
 0xa96   :  { %v1453_v38 = vmul.f32 %v3362_v30, %v1407_v0  ;;  %v1455_v6 = vmul.f32 %v3367_v31, %v1407_v0  ;;  %v1562_v7 = vpack.c.bf16 %v1449_v62, %v1446_v61 }
 0xa97   :  { %v1458_v8 = vpack.c.bf16 %v1409_v5, %v1405_v4  ;;  %v2717_v5 = vld [vmem:[#allocation2 + $0x48] sm:$0xff]  }
 0xa98   :  { %v1457_v9 = vpack.c.bf16 %v1455_v6, %v1454_v21  ;;  %v1456_v10 = vpack.c.bf16 %v1453_v38, %v1452_v3  ;;  %v2716_v3 = vld [vmem:[#allocation2 + $0x40] sm:$0xff]   ;;  %v2718_v21 = vld [vmem:[#allocation2 + $0x50] sm:$0xff]   ;;  %v2719_v38 = vld [vmem:[#allocation2 + $0x58] sm:$0xff]  }
 0xa99   :  { %2552 = vmatprep.subr.bf16.mxu1 %v1458_v8  ;;  %v2720_v6 = vld [vmem:[#allocation2 + $0x60] sm:$0xff]  }
 0xa9a   :  { %2553 = vmatpush3.bf16.xpose.msra.mxu1 %v1458_v8  ;;  %2554 = vmatprep.mubr.bf16.mxu1 %v1456_v10  ;;  %v2722_v8 = vld [vmem:[#allocation2 + $0x70] sm:$0xff]  }
 0xa9b   :  { %2558 = vmatprep.subr.bf16.mxu1 %v1562_v7 }
 0xaa1   :  { %2555 = vmatmul.mubr.bf16.vlgmr.msra.gmra.mrb[12].mxu1 %v1457_v9  ;;  %v2723_v9 = vld [vmem:[#allocation2 + $0x78] sm:$0xff]  }
 0xaa2   :  { %2559 = vmatpush3.bf16.msra.mxu1 %v1562_v7  ;;  %v2721_v7 = vld [vmem:[#allocation2 + $0x68] sm:$0xff]  }
 0xaa3   :  { %2564 = vmatprep.subr.bf16.mxu1 %v3056_v45 }
 0xb74   :  { %v2556_v11 = vpop.f32.mrb[12].mxu1 }
 0xb75   :  { %v1493_v12 = vpop.f32.mrb[13].mxu1  ;;  %v1510_v13 = vmul.f32 0.125, %v2556_v11  ;;  %v2828_v11 = vld [vmem:[%s3629_s2 + $0x1] ss:$0 sm:$0xff] }
 0xb76   :  { %v1508_v14 = vmul.f32 0.125, %v1493_v12  ;;  %v2557_v15 = vpop.f32.mrb[14].mxu1 }
 0xb77   :  { %v1496_v30 = vpop.f32.mrb[15].mxu1  ;;  %v1511_v20 = vmul.f32 0.125, %v2557_v15  ;;  %v1514_v28 = vadd.f32 %v1510_v13, %v3411_v54 }
 0xb78   :  { %v1509_v31 = vmul.f32 0.125, %v1496_v30  ;;  %v1512_v25 = vadd.f32 %v1508_v14, %v3416_v57  ;;  %v2829_v14 = vld [vmem:[%s3629_s2] ss:$0 sm:$0xff] }
 0xb79   :  { %v1515_v32 = vadd.f32 %v1511_v20, %v3421_v60  ;;  %v1522_v33 = vsel %vm515_vm1, %v1514_v28, -inf }
 0xb7a   :  { %v1516_v26 = vsel %vm515_vm1, %v1512_v25, -inf  ;;  %v1513_v27 = vadd.f32 %v1509_v31, %v3427_v1 }
 0xb7b   :  { %1517 = vmax.xlane.f32.xlu0 %v1516_v26  ;;  %v1525_v34 = vsel %vm515_vm1, %v1515_v32, -inf }
 0xb7c   :  { %v1519_v29 = vsel %vm515_vm1, %v1513_v27, -inf }
 0xb7d   :  { %1520 = vmax.xlane.f32.xlu1 %v1519_v29 }
 0xb7f   :  { %1523 = vmax.xlane.f32.xlu0 %v1522_v33 }
 0xb81   :  { %1526 = vmax.xlane.f32.xlu1 %v1525_v34 }
 0xc08   :  { %v1518_v35 = vpop.xlane.xlu0 %1517 }
 0xc09   :  { %v1528_v57 = vsub.f32 %v1512_v25, %v1518_v35 }
 0xc0a   :  { %v1521_v36 = vpop.xlane.xlu1 %1520 }
 0xc0b   :  { %v1532_v37 = vmul.f32 1.442695, %v1528_v57  ;;  %v1529_v39 = vsub.f32 %v1513_v27, %v1521_v36 }
 0xc0c   :  { %v1524_v1 = vpop.xlane.xlu0 %1523 }
 0xc0d   :  { %2796 = vpow2.f32 %v1532_v37  ;;  %v1534_v54 = vmul.f32 1.442695, %v1529_v39  ;;  %v1530_v40 = vsub.f32 %v1514_v28, %v1524_v1  ;;  %v2342_v28 = vld [vmem:[%s3633_s6 + $0x1] ss:$0 sm:$0xff]  ;;  %v2724_v39 = vld [vmem:[#allocation7 + $0x80] ss:$8 sps:$4 sm:$0xff]  }
 0xc0e   :  { %v1527_v41 = vpop.xlane.xlu1 %1526  ;;  %v2726_v1 = vld [vmem:[#allocation7 + $0x84] ss:$8 sps:$4 sm:$0xff]  }
 0xc0f   :  { %2798 = vpow2.f32 %v1534_v54  ;;  %v1536_v42 = vmul.f32 1.442695, %v1530_v40  ;;  %v1531_v60 = vsub.f32 %v1515_v32, %v1527_v41  ;;  %v2729_v54 = vld [vmem:[#allocation7 + $0x94] ss:$8 sps:$4 sm:$0xff]   ;;  %1894 = vmatprep.subr.bf16.mxu0 %v2726_v1  ;;  %v2727_v40 = vld [vmem:[#allocation7 + $0x90] ss:$8 sps:$4 sm:$0xff]  }
 0xc10   :  { %1895 = vmatpush1.bf16.msra.mxu0 %v2724_v39 }
 0xc11   :  { %2800 = vpow2.f32 %v1536_v42  ;;  %v1538_v43 = vmul.f32 1.442695, %v1531_v60  ;;  %1896 = vmatprep.subr.bf16.mxu0 %v2729_v54 }
 0xc13   :  { %2802 = vpow2.f32 %v1538_v43 }
 0xc14   :  { %1897 = vmatpush1.bf16.msra.mxu0 %v2727_v40 }
 0xc17   :  { %v2797_v44 = vpop.eup %2796 }
 0xc18   :  { %v1540_v46 = vsel %vm515_vm1, %v2797_v44, 0.0 }
 0xc19   :  { %v2799_v47 = vpop.eup %2798  ;;  %1541 = vadd.xlane.f32.xlu0 %v1540_v46 }
 0xc1a   :  { %v1543_v48 = vsel %vm515_vm1, %v2799_v47, 0.0 }
 0xc1b   :  { %v2801_v17 = vpop.eup %2800  ;;  %1544 = vadd.xlane.f32.xlu1 %v1543_v48  ;;  %v2730_v48 = vld [vmem:[#allocation7 + $0xa0] ss:$8 sps:$4 sm:$0xff]  }
 0xc1c   :  { %v1546_v18 = vsel %vm515_vm1, %v2801_v17, 0.0 }
 0xc1d   :  { %v2803_v51 = vpop.eup %2802  ;;  %1547 = vadd.xlane.f32.xlu0 %v1546_v18  ;;  %v2733_v18 = vld [vmem:[#allocation7 + $0xb0] ss:$8 sps:$4 sm:$0xff]  }
 0xc1e   :  { %v1549_v52 = vsel %vm515_vm1, %v2803_v51, 0.0 }
 0xc1f   :  { %1550 = vadd.xlane.f32.xlu1 %v1549_v52  ;;  %v2736_v52 = vld [vmem:[#allocation7 + $0xc0] ss:$8 sps:$4 sm:$0xff]  }
 0xca6   :  { %v1542_v23 = vpop.xlane.xlu0 %1541 }
 0xca7   :  { %2804 = vrcp.f32 %v1542_v23  ;;  %v2741_v23 = vld [vmem:[#allocation7 + $0xd4] ss:$8 sps:$4 sm:$0xff]  }
 0xca8   :  { %v1545_v53 = vpop.xlane.xlu1 %1544 }
 0xca9   :  { %2806 = vrcp.f32 %v1545_v53  ;;  %v2739_v53 = vld [vmem:[#allocation7 + $0xd0] ss:$8 sps:$4 sm:$0xff]  }
 0xcaa   :  { %v1548_v55 = vpop.xlane.xlu0 %1547 }
 0xcab   :  { %2808 = vrcp.f32 %v1548_v55  ;;  %v2744_v55 = vld [vmem:[#allocation7 + $0xe4] ss:$8 sps:$4 sm:$0xff]  }
 0xcac   :  { %v1551_v16 = vpop.xlane.xlu1 %1550 }
 0xcad   :  { %2810 = vrcp.f32 %v1551_v16  ;;  %v2742_v16 = vld [vmem:[#allocation7 + $0xe0] ss:$8 sps:$4 sm:$0xff]  }
 0xcb1   :  { %v2805_v19 = vpop.eup %2804 }
 0xcb2   :  { %v1553_v58 = vmul.f32 %v2805_v19, %v2797_v44  ;;  %v2747_v19 = vld [vmem:[#allocation7 + $0xf4] ss:$8 sps:$4 sm:$0xff]  }
 0xcb3   :  { %v2807_v56 = vpop.eup %2806 }
 0xcb4   :  { %v1555_v59 = vmul.f32 %v2807_v56, %v2799_v47  ;;  %v2745_v56 = vld [vmem:[#allocation7 + $0xf0] ss:$8 sps:$4 sm:$0xff]  }
 0xcb5   :  { %v2809_v61 = vpop.eup %2808 }
 0xcb6   :  { %v1560_v0 = vpack.c.bf16 %v1555_v59, %v1553_v58  ;;  %v1557_v63 = vmul.f32 %v2809_v61, %v2801_v17  ;;  %v2735_v17 = vld [vmem:[#allocation7 + $0xb4] ss:$8 sps:$4 sm:$0xff]  }
 0xcb7   :  { %v2811_v62 = vpop.eup %2810 }
 0xcb8   :  { %v1559_v2 = vmul.f32 %v2811_v62, %v2803_v51  ;;  %2560 = vmatprep.mubr.msk.bf16.mxu1 %vm515_vm1, %v1560_v0  ;;  %v2738_v51 = vld [vmem:[#allocation7 + $0xc4] ss:$8 sps:$4 sm:$0xff]  }
 0xcba   :  { %v1561_v4 = vpack.c.bf16 %v1559_v2, %v1557_v63 }
 0xcbc   :  { %2561 = vmatmul.mubr.msk.bf16.vlgmr.msra.gmra.mrb[16].mxu1 %vm515_vm1, %v1561_v4 }
 0xcbd   :  { %2565 = vmatpush3.bf16.msra.mxu1 %v2716_v3  ;;  %2580 = vmatprep.mubr.msk.bf16.mxu1 %vm3057_vm0, %v3056_v45  ;;  %v2351_v3 = vld [vmem:[#allocation4 + $0x1] ss:$0 sm:$0xff] }
 0xcbe   :  { %2566 = vmatprep.subr.bf16.mxu1 %v3056_v45 }
 0xcc1   :  { %2567 = vmatpush3.bf16.msra.mxu1 %v2717_v5 }
 0xcc2   :  { %2568 = vmatprep.subr.bf16.mxu1 %v3056_v45 }
 0xcc5   :  { %2569 = vmatpush3.bf16.msra.mxu1 %v2718_v21 }
 0xcc6   :  { %2570 = vmatprep.subr.bf16.mxu1 %v3056_v45 }
 0xcc9   :  { %2571 = vmatpush3.bf16.msra.mxu1 %v2719_v38 }
 0xcca   :  { %2572 = vmatprep.subr.bf16.mxu1 %v3056_v45 }
 0xccd   :  { %2573 = vmatpush3.bf16.msra.mxu1 %v2720_v6  ;;  %v2352_v6 = vld [vmem:[#allocation6 + $0x1] ss:$0 sm:$0xff] }
 0xcce   :  { %2574 = vmatprep.subr.bf16.mxu1 %v3056_v45 }
 0xcd1   :  { %2575 = vmatpush3.bf16.msra.mxu1 %v2721_v7 }
 0xcd2   :  { %2576 = vmatprep.subr.bf16.mxu1 %v3056_v45 }
 0xcd5   :  { %2577 = vmatpush3.bf16.msra.mxu1 %v2722_v8 }
 0xcd6   :  { %2578 = vmatprep.subr.bf16.mxu1 %v3056_v45 }
 0xcd9   :  { %2579 = vmatpush3.bf16.msra.mxu1 %v2723_v9 }
 0xd8f   :  { %v2562_v10 = vpop.f32.mrb[16].mxu1 }
 0xd90   :  { %v1620_v12 = vmul.f32 %v2828_v11, %v2562_v10  ;;  %v1603_v13 = vpop.f32.mrb[17].mxu1 }
 0xd91   :  { %v1618_v15 = vmul.f32 %v2829_v14, %v1603_v13  ;;  %v2563_v30 = vpop.f32.mrb[18].mxu1  ;;  %v2750_v13 = vld [vmem:[#allocation10 + $0xc8] sm:$0xff]  }
 0xd92   :  { %v1621_v20 = vmul.f32 %v2828_v11, %v2563_v30  ;;  %v1606_v31 = vpop.f32.mrb[19].mxu1  ;;  %v2748_v11 = vld [vmem:[#allocation10 + $0xc0] sm:$0xff]   ;;  %v2753_v30 = vld [vmem:[#allocation10 + $0x90] sm:$0xff]  }
 0xd93   :  { %v1622_v25 = vadd.f32 %v1620_v12, %v1618_v15  ;;  %v1619_v26 = vmul.f32 %v2829_v14, %v1606_v31  ;;  %v2749_v12 = vld [vmem:[#allocation10 + $0x80] sm:$0xff]   ;;  %2458 = vmatprep.subr.bf16.mxu1 %v2748_v11  ;;  %v2751_v14 = vld [vmem:[#allocation10 + $0x88] sm:$0xff]   ;;  %v2752_v15 = vld [vmem:[#allocation10 + $0xd0] sm:$0xff]  }
 0xd94   :  { %v2755_v31 = vld [vmem:[#allocation10 + $0x98] sm:$0xff]  }
 0xd95   :  { %v1623_v45 = vadd.f32 %v1621_v20, %v1619_v26  ;;  %v2754_v20 = vld [vmem:[#allocation10 + $0xd8] sm:$0xff]   ;;  %v2757_v26 = vld [vmem:[#allocation10 + $0xa0] sm:$0xff]  }
 0xd97   :  { %v1624_v27 = vpack.c.bf16 %v1623_v45, %v1622_v25  ;;  %v2756_v25 = vld [vmem:[#allocation10 + $0xe0] sm:$0xff]   ;;  %v2758_v45 = vld [vmem:[#allocation10 + $0xe8] sm:$0xff]  }
 0xd99   :  { %2581 = vmatmul.mubr.bf16.vlgmr.msra.gmra.mrb[20].mxu1 %v1624_v27  ;;  %v2759_v27 = vld [vmem:[#allocation10 + $0xa8] sm:$0xff]  }
 0xd9a   :  { %2459 = vmatpush3.bf16.msra.mxu1 %v2749_v12 }
 0xd9b   :  { %2460 = vmatprep.subr.bf16.mxu1 %v2750_v13 }
 0xd9e   :  { %2461 = vmatpush3.bf16.msra.mxu1 %v2751_v14 }
 0xd9f   :  { %2462 = vmatprep.subr.bf16.mxu1 %v2752_v15  ;;  %v2369_v15 = vld [vmem:[#allocation12 + $0x1] ss:$0 sm:$0xff] }
 0xda2   :  { %2463 = vmatpush3.bf16.msra.mxu1 %v2753_v30 }
 0xda3   :  { %2464 = vmatprep.subr.bf16.mxu1 %v2754_v20 }
 0xda6   :  { %2465 = vmatpush3.bf16.msra.mxu1 %v2755_v31 }
 0xda7   :  { %2466 = vmatprep.subr.bf16.mxu1 %v2756_v25 }
 0xdaa   :  { %2467 = vmatpush3.bf16.msra.mxu1 %v2757_v26 }
 0xdab   :  { %2468 = vmatprep.subr.bf16.mxu1 %v2758_v45 }
 0xdae   :  { %2469 = vmatpush3.bf16.msra.mxu1 %v2759_v27 }
 0xe6c   :  { %v1732_v29 = vpop.f32.mrb[20].mxu1 }
 0xe6d   :  { %v1733_v32 = vadd.f32 %v2342_v28, %v1732_v29  ;;  %v2582_v33 = vpop.f32.mrb[21].mxu1  ;;  %v2761_v29 = vld [vmem:[#allocation10 + $0xb0] sm:$0xff]  }
 0xe6e   :  { %v1735_v34 = vpop.f32.mrb[22].mxu1  ;;  %v2763_v33 = vld [vmem:[#allocation10 + $0xb8] sm:$0xff]  }
 0xe6f   :  { %v1736_v35 = vadd.f32 %v2342_v28, %v1735_v34  ;;  %v2583_v57 = vpop.f32.mrb[23].mxu1  ;;  %v1739_v36 = vadd.f32 %v1733_v32, %v3558_v49  ;;  %v2760_v28 = vld [vmem:[#allocation10 + $0xf0] sm:$0xff]   ;;  %v2762_v32 = vld [vmem:[#allocation10 + $0xf8] sm:$0xff]  }
 0xe70   :  { %2470 = vmatprep.subr.bf16.mxu1 %v2760_v28  ;;  %v1802_v34 = vld [vmem:[#allocation9 + $0x2] sm:$0x3] }
 0xe71   :  { %1745 = vadd.xlane.f32.xlu0 %v1739_v36  ;;  %v1740_v37 = vadd.f32 %v1736_v35, %v3560_v50  ;;  %v2732_v50 = vld [vmem:[#allocation7 + $0xa4] ss:$8 sps:$4 sm:$0xff]   ;;  %2471 = vmatpush3.bf16.msra.mxu1 %v2761_v29  ;;  %v1807_v35 = vrot.slane %v1802_v34, %v3345_v22  ;;  %v1811_v57 = vrot.slane %v1802_v34, %v3353_v24 }
 0xe72   :  { %1898 = vmatprep.subr.bf16.mxu0 %v2732_v50  ;;  %2472 = vmatprep.subr.bf16.mxu1 %v2762_v32 }
 0xe73   :  { %1747 = vadd.xlane.f32.xlu1 %v1740_v37  ;;  %1899 = vmatpush1.bf16.msra.mxu0 %v2730_v48 }
 0xe74   :  { %1900 = vmatprep.subr.bf16.mxu0 %v2735_v17 }
 0xe75   :  { %2473 = vmatpush3.bf16.msra.mxu1 %v2763_v33 }
 0xe77   :  { %1901 = vmatpush1.bf16.msra.mxu0 %v2733_v18 }
 0xe78   :  { %1902 = vmatprep.subr.bf16.mxu0 %v2738_v51 }
 0xe7b   :  { %1903 = vmatpush1.bf16.msra.mxu0 %v2736_v52 }
 0xe7c   :  { %1904 = vmatprep.subr.bf16.mxu0 %v2741_v23 }
 0xe7f   :  { %1905 = vmatpush1.bf16.msra.mxu0 %v2739_v53 }
 0xe80   :  { %1906 = vmatprep.subr.bf16.mxu0 %v2744_v55 }
 0xe83   :  { %1907 = vmatpush1.bf16.msra.mxu0 %v2742_v16 }
 0xe84   :  { %1908 = vmatprep.subr.bf16.mxu0 %v2747_v19 }
 0xe87   :  { %1909 = vmatpush1.bf16.msra.mxu0 %v2745_v56 }
 0xefe   :  { %v1746_v41 = vpop.xlane.xlu0 %1745 }
 0xeff   :  { %v1749_v42 = vmul.f32 0.0078125, %v1746_v41 }
 0xf00   :  { %v1748_v60 = vpop.xlane.xlu1 %1747 }
 0xf01   :  { %v1751_v43 = vsub.f32 %v1739_v36, %v1749_v42  ;;  %v1750_v44 = vmul.f32 0.0078125, %v1748_v60 }
 0xf03   :  { %v1752_v46 = vsub.f32 %v1740_v37, %v1750_v44  ;;  %v1753_v47 = vmul.f32 %v1751_v43, %v1751_v43 }
 0xf05   :  { %1755 = vadd.xlane.f32.xlu0 %v1753_v47  ;;  %v1754_v49 = vmul.f32 %v1752_v46, %v1752_v46 }
 0xf07   :  { %1757 = vadd.xlane.f32.xlu1 %v1754_v49 }
 0xf92   :  { %v1756_v58 = vpop.xlane.xlu0 %1755 }
 0xf93   :  { %v1759_v59 = vmul.f32 0.0078125, %v1756_v58 }
 0xf94   :  { %v1758_v61 = vpop.xlane.xlu1 %1757 }
 0xf95   :  { %v1761_v0 = vadd.f32 1e-12, %v1759_v59  ;;  %v1760_v62 = vmul.f32 0.0078125, %v1758_v61 }
 0xf97   :  { %2812 = vrsqrt.f32 %v1761_v0  ;;  %v1762_v63 = vadd.f32 1e-12, %v1760_v62 }
 0xf99   :  { %2814 = vrsqrt.f32 %v1762_v63 }
 0xfa1   :  { %v2813_v2 = vpop.eup %2812 }
 0xfa2   :  { %v1765_v4 = vmul.f32 %v2813_v2, %v1751_v43 }
 0xfa3   :  { %v2815_v5 = vpop.eup %2814 }
 0xfa4   :  { %v1766_v21 = vmul.f32 %v2815_v5, %v1752_v46  ;;  %v1773_v38 = vmul.f32 %v2351_v3, %v1765_v4 }
 0xfa6   :  { %v1774_v7 = vmul.f32 %v2351_v3, %v1766_v21  ;;  %v3611_v8 = vadd.f32 %v2352_v6, %v1773_v38 }
 0xfa8   :  { %v3613_v9 = vadd.f32 %v2352_v6, %v1774_v7 }
 0xfaa   :  { %v1783_v10 = vpack.c.bf16 %v3613_v9, %v3611_v8 }
 0xfac   :  { %1927 = vmatmul.mubr.bf16.vlgmr.msra.gmra.mrb[24].mxu0 %v1783_v10 }
0x107f   :  { %v1928_v36 = vpop.f32.mrb[24].mxu0 }
0x1080   :  { %v1929_v37 = vadd.f32 %v1928_v36, %v1807_v35  ;;  %v1930_v39 = vpop.f32.mrb[25].mxu0 }
0x1081   :  { %v1931_v1 = vadd.f32 %v1930_v39, %v1811_v57  ;;  %v1932_v54 = vpop.f32.mrb[26].mxu0 }
0x1082   :  { %v1941_v40 = vmul.f32 0.044715, %v1929_v37  ;;  %v1933_v41 = vadd.f32 %v1932_v54, %v1807_v35  ;;  %v1934_v42 = vpop.f32.mrb[27].mxu0  ;;  %v1937_v2 = vmul.f32 0.5, %v1929_v37 }
0x1083   :  { %v1942_v60 = vmul.f32 0.044715, %v1931_v1  ;;  %v1935_v43 = vadd.f32 %v1934_v42, %v1811_v57  ;;  %v1938_v5 = vmul.f32 0.5, %v1931_v1 }
0x1084   :  { %v1945_v44 = vmul.f32 %v1941_v40, %v1929_v37  ;;  %v1943_v46 = vmul.f32 0.044715, %v1933_v41  ;;  %v1939_v3 = vmul.f32 0.5, %v1933_v41 }
0x1085   :  { %v1946_v47 = vmul.f32 %v1942_v60, %v1931_v1  ;;  %v1944_v49 = vmul.f32 0.044715, %v1935_v43  ;;  %v1940_v21 = vmul.f32 0.5, %v1935_v43  ;;  %v2386_v60 = vld [vmem:[#allocation13 + $0x1] ss:$0 sm:$0xff] }
0x1086   :  { %v1949_v50 = vmul.f32 %v1945_v44, %v1929_v37  ;;  %v1947_v48 = vmul.f32 %v1943_v46, %v1933_v41  ;;  %v2387_v46 = vld [vmem:[#allocation15 + $0x1] ss:$0 sm:$0xff] }
0x1087   :  { %v1950_v17 = vmul.f32 %v1946_v47, %v1931_v1  ;;  %v1948_v22 = vmul.f32 %v1944_v49, %v1935_v43 }
0x1088   :  { %v1953_v18 = vadd.f32 %v1949_v50, %v1929_v37  ;;  %v1951_v24 = vmul.f32 %v1947_v48, %v1933_v41 }
0x1089   :  { %v1952_v51 = vmul.f32 %v1948_v22, %v1935_v43  ;;  %v1954_v52 = vadd.f32 %v1950_v17, %v1931_v1 }
0x108a   :  { %v1957_v23 = vmul.f32 0.7978846, %v1953_v18  ;;  %v1955_v53 = vadd.f32 %v1951_v24, %v1933_v41 }
0x108b   :  { %v1956_v55 = vadd.f32 %v1952_v51, %v1935_v43  ;;  %v1958_v16 = vmul.f32 0.7978846, %v1954_v52 }
0x108c   :  { %2816 = vtanh.f32 %v1957_v23  ;;  %v1959_v19 = vmul.f32 0.7978846, %v1955_v53 }
0x108d   :  { %v1960_v56 = vmul.f32 0.7978846, %v1956_v55  ;;  %2818 = vtanh.f32 %v1958_v16 }
0x108e   :  { %2820 = vtanh.f32 %v1959_v19 }
0x108f   :  { %2822 = vtanh.f32 %v1960_v56 }
0x1096   :  { %v2817_v58 = vpop.eup %2816 }
0x1097   :  { %v2819_v59 = vpop.eup %2818  ;;  %v1965_v61 = vadd.f32 1.0, %v2817_v58 }
0x1098   :  { %v2821_v0 = vpop.eup %2820  ;;  %v1966_v62 = vadd.f32 1.0, %v2819_v59 }
0x1099   :  { %v2823_v63 = vpop.eup %2822  ;;  %v1967_v4 = vadd.f32 1.0, %v2821_v0  ;;  %v1969_v6 = vmul.f32 %v1965_v61, %v1937_v2 }
0x109a   :  { %v1968_v38 = vadd.f32 1.0, %v2823_v63  ;;  %v1970_v10 = vmul.f32 %v1966_v62, %v1938_v5 }
0x109b   :  { %v1971_v7 = vmul.f32 %v1967_v4, %v1939_v3 }
0x109c   :  { %v1972_v11 = vmul.f32 %v1968_v38, %v1940_v21 }
0x109d   :  { %v1973_v12 = vpack.c.bf16 %v1971_v7, %v1969_v6 }
0x109e   :  { %v1974_v13 = vpack.c.bf16 %v1972_v11, %v1970_v10 }
0x10a0   :  { %2144 = vmatprep.mubr.bf16.mxu1 %v1974_v13 }
0x10a1   :  { %2145 = vmatmul.mubr.bf16.vlgmr.msra.gmra.mrb[24].mxu1 %v1973_v12 }
0x1174   :  { %v2474_v14 = vpop.f32.mrb[24].mxu1 }
0x1175   :  { %v2475_v30 = vpop.f32.mrb[25].mxu1 }
0x1176   :  { %v2476_v20 = vadd.f32 %v2475_v30, %v2474_v14  ;;  %v2477_v31 = vpop.f32.mrb[26].mxu1 }
0x1177   :  { %v2478_v25 = vpop.f32.mrb[27].mxu1 }
0x1178   :  { %v2147_v26 = vadd.f32 %v2476_v20, %v2369_v15  ;;  %v2479_v45 = vadd.f32 %v2478_v25, %v2477_v31 }
0x117a   :  { %v2150_v27 = vadd.f32 %v2479_v45, %v2369_v15  ;;  %v2153_v28 = vadd.f32 %v2147_v26, %v3611_v8 }
0x117c   :  { %2159 = vadd.xlane.f32.xlu0 %v2153_v28  ;;  %v2154_v29 = vadd.f32 %v2150_v27, %v3613_v9 }
0x117e   :  { %2161 = vadd.xlane.f32.xlu1 %v2154_v29 }
0x1209   :  { %v2160_v32 = vpop.xlane.xlu0 %2159 }
0x120a   :  { %v2163_v33 = vmul.f32 0.0078125, %v2160_v32 }
0x120b   :  { %v2162_v34 = vpop.xlane.xlu1 %2161 }
0x120c   :  { %v2165_v35 = vsub.f32 %v2153_v28, %v2163_v33  ;;  %v2164_v57 = vmul.f32 0.0078125, %v2162_v34 }
0x120e   :  { %v2166_v36 = vsub.f32 %v2154_v29, %v2164_v57  ;;  %v2167_v37 = vmul.f32 %v2165_v35, %v2165_v35 }
0x1210   :  { %2169 = vadd.xlane.f32.xlu0 %v2167_v37  ;;  %v2168_v39 = vmul.f32 %v2166_v36, %v2166_v36 }
0x1212   :  { %2171 = vadd.xlane.f32.xlu1 %v2168_v39 }
0x129d   :  { %v2170_v1 = vpop.xlane.xlu0 %2169 }
0x129e   :  { %v2173_v54 = vmul.f32 0.0078125, %v2170_v1 }
0x129f   :  { %v2172_v40 = vpop.xlane.xlu1 %2171 }
0x12a0   :  { %v2175_v41 = vadd.f32 1e-12, %v2173_v54  ;;  %v2174_v42 = vmul.f32 0.0078125, %v2172_v40 }
0x12a2   :  { %2824 = vrsqrt.f32 %v2175_v41  ;;  %v2176_v8 = vadd.f32 1e-12, %v2174_v42 }
0x12a4   :  { %2826 = vrsqrt.f32 %v2176_v8 }
0x12ac   :  { %v2825_v9 = vpop.eup %2824 }
0x12ad   :  { %v2179_v43 = vmul.f32 %v2825_v9, %v2165_v35 }
0x12ae   :  { %v2827_v44 = vpop.eup %2826 }
0x12af   :  { %v2187_v47 = vmul.f32 %v2386_v60, %v2179_v43  ;;  %v2180_v49 = vmul.f32 %v2827_v44, %v2166_v36 }
0x12b1   :  { %v2195_v50 = vadd.f32 %v2387_v46, %v2187_v47  ;;  %v2188_v48 = vmul.f32 %v2386_v60, %v2180_v49 }
0x12b3   :  { %2197 = vst [vmem:[%s3642_s15] sm:$0xff] %v2195_v50  ;;  %v2196_v17 = vadd.f32 %v2387_v46, %v2188_v48 }
0x12b5   :  { %2198 = vst [vmem:[%s3642_s15 + $0x8] sm:$0xff] %v2196_v17 }
0x12b6   :  { %2203 = vsyncpa [#allocation3], 1 }
0x12b7   :  { %2204 = vsyncpa [#allocation5], 1 }
0x12b8   :  { %2205 = vsyncpa [#allocation8], 1 }
0x12b9   :  { %2206 = vsyncpa [#allocation11], 1 }
0x12ba   :  { %2207 = vsyncpa [#allocation14], 1 }

</bundles_post_ra>
